<compile_context>
chip_gen: v5e
topology: v5e:2x2
jax: 0.10.0
libtpu: 0.0.40
codegen_flags: <defaults>
</compile_context>

<pallas_src>
import functools
import math

import jax
import jax.numpy as jnp
from jax.experimental import pallas as pl
from jax.experimental.pallas import tpu as pltpu

# Small hyperparameters consistent with the module's constructor.
IN_SIZE = 16      # in_size
N_HEADS = 4       # n_heads
N_UNITS = 32      # n_units (embed dim)
N_LAYERS = 2      # n_layers
DIM_FF = 64       # dim_feedforward
HEAD_DIM = N_UNITS // N_HEADS
BN_EPS = 1e-5
LN_EPS = 1e-5

NEG_BIG = -1e30   # additive mask value for cross-sequence attention scores


def _layer_norm(x, g, b, eps=LN_EPS):
    m = jnp.mean(x, axis=-1, keepdims=True)
    v = jnp.mean((x - m) ** 2, axis=-1, keepdims=True)
    return (x - m) * jax.lax.rsqrt(v + eps) * g + b


def _encoder_kernel(Bb, T,
                    src_ref, attn_bias_ref,
                    enc_w_ref, enc_b_ref, eln_g_ref, eln_b_ref,
                    qkv_w_ref, qkv_b_ref,
                    out_w_ref, out_b_ref, ln1_g_ref, ln1_b_ref,
                    ff_w1_ref, ff_b1_ref, ff_w2_ref, ff_b2_ref,
                    ln2_g_ref, ln2_b_ref,
                    out_ref):
    E = N_UNITS
    Dh = HEAD_DIM

    x = src_ref[...]                                        # (M, F), rows = Bb*T tokens

    # encoder Linear (with eval-mode BatchNorm folded in) + LayerNorm.
    x = jnp.dot(x, enc_w_ref[...], preferred_element_type=jnp.float32) + enc_b_ref[...]
    x = _layer_norm(x, eln_g_ref[...], eln_b_ref[...])

    for l in range(N_LAYERS):                               # static unroll (L=2)
        # --- multi-head self-attention (post-norm TransformerEncoderLayer) ---
        # Fused QKV projection: one (M, E) @ (E, 3E) matmul.  The 1/sqrt(Dh)
        # scale is already folded into the Q columns (wrapper).
        qkv = (jnp.dot(x, qkv_w_ref[l], preferred_element_type=jnp.float32)
               + qkv_b_ref[l])                              # (M, 3E)

        heads = []
        for h in range(N_HEADS):                            # static unroll (H=4)
            qh = qkv[:, h * Dh:(h + 1) * Dh]                # (M, Dh) static lane slices
            kh = qkv[:, E + h * Dh:E + (h + 1) * Dh]
            vh = qkv[:, 2 * E + h * Dh:2 * E + (h + 1) * Dh]

            # One wide (M, Dh) @ (Dh, M) matmul; cross-sequence entries are
            # pushed to -1e30 by the block-diagonal bias and vanish in softmax.
            s = (jnp.dot(qh, kh.T, preferred_element_type=jnp.float32)
                 + attn_bias_ref[...])                      # (M, M)
            s = s - jnp.max(s, axis=-1, keepdims=True)
            p = jnp.exp(s)
            p = p * pl.reciprocal(jnp.sum(p, axis=-1, keepdims=True), approx=False)
            # Context: one wide (M, M) @ (M, Dh) matmul (full-depth contraction).
            heads.append(jnp.dot(p, vh, preferred_element_type=jnp.float32))

        attn = jnp.concatenate(heads, axis=-1)              # (M, E) — 32 lanes, 1 vreg
        attn = (jnp.dot(attn, out_w_ref[l], preferred_element_type=jnp.float32)
                + out_b_ref[l])                             # single fused out-proj
        x = _layer_norm(x + attn, ln1_g_ref[l], ln1_b_ref[l])

        # --- feed-forward (ReLU) ---
        h1 = jnp.maximum(
            jnp.dot(x, ff_w1_ref[l], preferred_element_type=jnp.float32) + ff_b1_ref[l],
            0.0)
        h2 = jnp.dot(h1, ff_w2_ref[l], preferred_element_type=jnp.float32) + ff_b2_ref[l]
        x = _layer_norm(x + h2, ln2_g_ref[l], ln2_b_ref[l])

    out_ref[...] = x                                        # (M, E)


def masked_transformer_encoder_forward(src_list, params, block_b=16):
    """Forward pass: list of (T_i, F) -> (B, T_max, E)."""
    B = len(src_list)
    T = max(int(s.shape[0]) for s in src_list)
    F = IN_SIZE
    E = N_UNITS
    L = N_LAYERS
    H = N_HEADS
    Dh = HEAD_DIM
    D = DIM_FF

    # Sequences per grid step.  Kept moderate (default 16 -> M = Bb*T = 128
    # rows) to bound the live vreg set; additionally capped at ceil(B/2) so the
    # parallel grid axis has >= 2 steps and both v7x TensorCores get work.
    Bb = max(1, min(block_b, B))
    if B >= 2:
        Bb = min(Bb, (B + 1) // 2)
    nblk = pl.cdiv(B, Bb)
    Bp = nblk * Bb
    M = Bb * T

    # nn.utils.rnn.pad_sequence(padding_value=-1, batch_first=True); extra
    # all(-1) sequences pad the batch up to a multiple of Bb (discarded later).
    padded = [jnp.pad(s.astype(jnp.float32), ((0, T - s.shape[0]), (0, 0)),
                      constant_values=-1.0) for s in src_list]
    padded += [jnp.full((T, F), -1.0, jnp.float32)] * (Bp - B)
    src = jnp.stack(padded).reshape(Bp * T, F)              # rows flattened

    # BatchNorm1d eval-mode affine folded into the encoder Linear.
    bn_scale = params['bn_gamma'] / jnp.sqrt(params['bn_var'] + BN_EPS)
    bn_shift = params['bn_beta'] - params['bn_mean'] * bn_scale
    enc_w = bn_scale[:, None] * params['enc_w']             # (F, E)
    enc_b = params['enc_b'] + bn_shift @ params['enc_w']    # (E,)

    # Fold 1/sqrt(Dh) into the Q columns of the fused in-projection.
    scale = 1.0 / math.sqrt(Dh)
    col_scale = jnp.concatenate([jnp.full((E,), scale, jnp.float32),
                                 jnp.ones((2 * E,), jnp.float32)])
    qkv_w = params['qkv_w'] * col_scale                     # (L, E, 3E)
    qkv_b = params['qkv_b'] * col_scale                     # (L, 3E)

    # Block-diagonal additive bias: 0 inside a sequence's own TxT block,
    # -1e30 for cross-sequence score entries (exactly removed by softmax).
    blk_id = jnp.arange(M, dtype=jnp.int32) // T
    attn_bias = jnp.where(blk_id[:, None] == blk_id[None, :], 0.0, NEG_BIG
                          ).astype(jnp.float32)             # (M, M)

    args = (
        src, attn_bias,
        enc_w, enc_b.reshape(1, E),
        params['eln_g'].reshape(1, E), params['eln_b'].reshape(1, E),
        qkv_w, qkv_b.reshape(L, 1, 3 * E),
        params['out_w'], params['out_b'].reshape(L, 1, E),
        params['ln1_g'].reshape(L, 1, E), params['ln1_b'].reshape(L, 1, E),
        params['ff_w1'], params['ff_b1'].reshape(L, 1, D),
        params['ff_w2'], params['ff_b2'].reshape(L, 1, E),
        params['ln2_g'].reshape(L, 1, E), params['ln2_b'].reshape(L, 1, E),
    )

    def const_spec(a):
        nd = a.ndim
        return pl.BlockSpec(a.shape, lambda i, _nd=nd: (0,) * _nd)

    in_specs = [pl.BlockSpec((M, F), lambda i: (i, 0))] + \
               [const_spec(a) for a in args[1:]]

    # Advisory cost estimate for XLA scheduling around the custom call.
    flops = int(nblk * (2 * M * F * E
                        + L * (2 * M * E * 3 * E          # fused qkv
                               + H * 4 * M * M * Dh       # scores + context
                               + 2 * M * E * E            # out proj
                               + 4 * M * E * D)))         # feed-forward
    transcendentals = int(nblk * (L * (H * M * M + 3 * M) + M))
    bytes_accessed = int(4 * (Bp * T * (F + E) + M * M + F * E + 5 * E
                              + L * (3 * E * E + E * E + 2 * E * D + 10 * E + D)))

    out = pl.pallas_call(
        functools.partial(_encoder_kernel, Bb, T),
        out_shape=jax.ShapeDtypeStruct((Bp * T, E), jnp.float32),
        grid=(nblk,),
        in_specs=in_specs,
        out_specs=pl.BlockSpec((M, E), lambda i: (i, 0)),
        compiler_params=pltpu.CompilerParams(dimension_semantics=("parallel",)),
        cost_estimate=pl.CostEstimate(flops=flops,
                                      transcendentals=transcendentals,
                                      bytes_accessed=bytes_accessed),
    )(*args)
    return out.reshape(Bp, T, E)[:B]


# ---------------- deterministic synthetic parameters ----------------
def init_params(key):
    keys = jax.random.split(key, 13)
    u = lambda k, shape: jax.random.uniform(k, shape, jnp.float32, -0.1, 0.1)
    E, F, L, D = N_UNITS, IN_SIZE, N_LAYERS, DIM_FF
    return {
        'bn_gamma': 1.0 + u(keys[0], (F,)),
        'bn_beta': u(keys[1], (F,)),
        'bn_mean': u(keys[2], (F,)),
        'bn_var': 1.0 + jnp.abs(u(keys[3], (F,))),
        'enc_w': u(keys[4], (F, E)),
        'enc_b': jnp.zeros((E,), jnp.float32),
        'eln_g': jnp.ones((E,), jnp.float32),
        'eln_b': jnp.zeros((E,), jnp.float32),
        'qkv_w': u(keys[5], (L, E, 3 * E)),
        'qkv_b': u(keys[6], (L, 3 * E)),
        'out_w': u(keys[7], (L, E, E)),
        'out_b': u(keys[8], (L, E)),
        'ln1_g': jnp.ones((L, E), jnp.float32),
        'ln1_b': jnp.zeros((L, E), jnp.float32),
        'ff_w1': u(keys[9], (L, E, D)),
        'ff_b1': u(keys[10], (L, D)),
        'ff_w2': u(keys[11], (L, D, E)),
        'ff_b2': u(keys[12], (L, E)),
        'ln2_g': jnp.ones((L, E), jnp.float32),
        'ln2_b': jnp.zeros((L, E), jnp.float32),
    }


# ---------------- pure-JAX reference (for correctness check) ----------------
def _ref_single(x, p):
    E, Dh = N_UNITS, HEAD_DIM
    scale = 1.0 / math.sqrt(Dh)
    bn_scale = p['bn_gamma'] / jnp.sqrt(p['bn_var'] + BN_EPS)
    bn_shift = p['bn_beta'] - p['bn_mean'] * bn_scale
    x = x * bn_scale + bn_shift
    x = x @ p['enc_w'] + p['enc_b']
    x = _layer_norm(x, p['eln_g'], p['eln_b'])
    for l in range(N_LAYERS):
        qkv = x @ p['qkv_w'][l] + p['qkv_b'][l]
        q, k, v = qkv[:, :E], qkv[:, E:2 * E], qkv[:, 2 * E:]
        heads = []
        for h in range(N_HEADS):
            sl = slice(h * Dh, (h + 1) * Dh)
            s = (q[:, sl] * scale) @ k[:, sl].T
            heads.append(jax.nn.softmax(s, axis=-1) @ v[:, sl])
        attn = jnp.concatenate(heads, axis=-1) @ p['out_w'][l] + p['out_b'][l]
        x = _layer_norm(x + attn, p['ln1_g'][l], p['ln1_b'][l])
        h1 = jax.nn.relu(x @ p['ff_w1'][l] + p['ff_b1'][l])
        h2 = h1 @ p['ff_w2'][l] + p['ff_b2'][l]
        x = _layer_norm(x + h2, p['ln2_g'][l], p['ln2_b'][l])
    return x


def reference_forward(src_list, params):
    T = max(int(s.shape[0]) for s in src_list)
    padded = [jnp.pad(s.astype(jnp.float32), ((0, T - s.shape[0]), (0, 0)),
                      constant_values=-1.0) for s in src_list]
    return jnp.stack([_ref_single(x, params) for x in padded])


if __name__ == "__main__":
    key = jax.random.PRNGKey(0)
    kp, k1, k2 = jax.random.split(key, 3)
    params = init_params(kp)

    # two variable-length sequences (T_i, in_size) -> padded to (2, 8, 16)
    src_list = [
        jax.random.normal(k1, (8, IN_SIZE), jnp.float32),
        jax.random.normal(k2, (6, IN_SIZE), jnp.float32),
    ]

    out = masked_transformer_encoder_forward(src_list, params)
    out = jax.block_until_ready(out)

    ref = reference_forward(src_list, params)
    assert out.shape == (2, 8, N_UNITS), out.shape
    err = float(jnp.max(jnp.abs(out - ref)))
    assert jnp.allclose(out, ref, atol=2e-3, rtol=2e-3), err

    print("KERNEL_OK")
</pallas_src>

<mosaic_0001>
module attributes {stable_mosaic.version = 11 : i64} {
  func.func @_encoder_kernel(%arg0: i32, %arg1: memref<8x16xf32, #tpu.memory_space<vmem>>, %arg2: memref<8x8xf32, #tpu.memory_space<vmem>>, %arg3: memref<16x32xf32, #tpu.memory_space<vmem>>, %arg4: memref<1x32xf32, #tpu.memory_space<vmem>>, %arg5: memref<1x32xf32, #tpu.memory_space<vmem>>, %arg6: memref<1x32xf32, #tpu.memory_space<vmem>>, %arg7: memref<2x32x96xf32, #tpu.memory_space<vmem>>, %arg8: memref<2x1x96xf32, #tpu.memory_space<vmem>>, %arg9: memref<2x32x32xf32, #tpu.memory_space<vmem>>, %arg10: memref<2x1x32xf32, #tpu.memory_space<vmem>>, %arg11: memref<2x1x32xf32, #tpu.memory_space<vmem>>, %arg12: memref<2x1x32xf32, #tpu.memory_space<vmem>>, %arg13: memref<2x32x64xf32, #tpu.memory_space<vmem>>, %arg14: memref<2x1x64xf32, #tpu.memory_space<vmem>>, %arg15: memref<2x64x32xf32, #tpu.memory_space<vmem>>, %arg16: memref<2x1x32xf32, #tpu.memory_space<vmem>>, %arg17: memref<2x1x32xf32, #tpu.memory_space<vmem>>, %arg18: memref<2x1x32xf32, #tpu.memory_space<vmem>>, %arg19: memref<8x32xf32, #tpu.memory_space<vmem>>) attributes {dimension_semantics = [#tpu.dimension_semantics<parallel>], iteration_bounds = array<i64: 2>, scalar_prefetch = 0 : i64, scratch_operands = 0 : i64, tpu.core_type = #tpu.core_type<tc>, window_params = [{transform_indices = @transform_0, window_bounds = array<i64: 8, 16>}, {pipeline_mode = #tpu.pipeline_mode<synchronous>, transform_indices = @transform_1, window_bounds = array<i64: 8, 8>}, {pipeline_mode = #tpu.pipeline_mode<synchronous>, transform_indices = @transform_2, window_bounds = array<i64: 16, 32>}, {pipeline_mode = #tpu.pipeline_mode<synchronous>, transform_indices = @transform_3, window_bounds = array<i64: 1, 32>}, {pipeline_mode = #tpu.pipeline_mode<synchronous>, transform_indices = @transform_4, window_bounds = array<i64: 1, 32>}, {pipeline_mode = #tpu.pipeline_mode<synchronous>, transform_indices = @transform_5, window_bounds = array<i64: 1, 32>}, {pipeline_mode = #tpu.pipeline_mode<synchronous>, transform_indices = @transform_6, window_bounds = array<i64: 2, 32, 96>}, {pipeline_mode = #tpu.pipeline_mode<synchronous>, transform_indices = @transform_7, window_bounds = array<i64: 2, 1, 96>}, {pipeline_mode = #tpu.pipeline_mode<synchronous>, transform_indices = @transform_8, window_bounds = array<i64: 2, 32, 32>}, {pipeline_mode = #tpu.pipeline_mode<synchronous>, transform_indices = @transform_9, window_bounds = array<i64: 2, 1, 32>}, {pipeline_mode = #tpu.pipeline_mode<synchronous>, transform_indices = @transform_10, window_bounds = array<i64: 2, 1, 32>}, {pipeline_mode = #tpu.pipeline_mode<synchronous>, transform_indices = @transform_11, window_bounds = array<i64: 2, 1, 32>}, {pipeline_mode = #tpu.pipeline_mode<synchronous>, transform_indices = @transform_12, window_bounds = array<i64: 2, 32, 64>}, {pipeline_mode = #tpu.pipeline_mode<synchronous>, transform_indices = @transform_13, window_bounds = array<i64: 2, 1, 64>}, {pipeline_mode = #tpu.pipeline_mode<synchronous>, transform_indices = @transform_14, window_bounds = array<i64: 2, 64, 32>}, {pipeline_mode = #tpu.pipeline_mode<synchronous>, transform_indices = @transform_15, window_bounds = array<i64: 2, 1, 32>}, {pipeline_mode = #tpu.pipeline_mode<synchronous>, transform_indices = @transform_16, window_bounds = array<i64: 2, 1, 32>}, {pipeline_mode = #tpu.pipeline_mode<synchronous>, transform_indices = @transform_17, window_bounds = array<i64: 2, 1, 32>}, {transform_indices = @transform_18, window_bounds = array<i64: 8, 32>}]} {
    %c0 = arith.constant 0 : index
    %c0_0 = arith.constant 0 : index
    %0 = vector.load %arg1[%c0, %c0_0] : memref<8x16xf32, #tpu.memory_space<vmem>>, vector<8x16xf32>
    %c0_1 = arith.constant 0 : index
    %c0_2 = arith.constant 0 : index
    %1 = vector.load %arg3[%c0_1, %c0_2] : memref<16x32xf32, #tpu.memory_space<vmem>>, vector<16x32xf32>
    %cst = arith.constant dense<0.000000e+00> : vector<8x32xf32>
    %2 = tpu.matmul %0, %1, %cst {dimension_numbers = #tpu.dot_dimension_numbers<[1], [0], [0], [1], [0, 0, 1, 1], [], []>} : vector<8x16xf32>, vector<16x32xf32>, vector<8x32xf32> -> vector<8x32xf32>
    %c0_3 = arith.constant 0 : index
    %c0_4 = arith.constant 0 : index
    %3 = vector.load %arg4[%c0_3, %c0_4] : memref<1x32xf32, #tpu.memory_space<vmem>>, vector<1x32xf32>
    %4 = vector.broadcast %3 : vector<1x32xf32> to vector<8x32xf32>
    %5 = arith.addf %2, %4 : vector<8x32xf32>
    %c0_5 = arith.constant 0 : index
    %c0_6 = arith.constant 0 : index
    %6 = vector.load %arg5[%c0_5, %c0_6] : memref<1x32xf32, #tpu.memory_space<vmem>>, vector<1x32xf32>
    %c0_7 = arith.constant 0 : index
    %c0_8 = arith.constant 0 : index
    %7 = vector.load %arg6[%c0_7, %c0_8] : memref<1x32xf32, #tpu.memory_space<vmem>>, vector<1x32xf32>
    %cst_9 = arith.constant dense<0.000000e+00> : vector<8xf32>
    %8 = vector.multi_reduction <add>, %5, %cst_9 [1] : vector<8x32xf32> to vector<8xf32>
    %9 = vector.shape_cast %8 : vector<8xf32> to vector<8x1xf32>
    %cst_10 = arith.constant 3.200000e+01 : f32
    %10 = vector.broadcast %cst_10 : f32 to vector<8x1xf32>
    %11 = arith.divf %9, %10 : vector<8x1xf32>
    %12 = vector.broadcast %11 : vector<8x1xf32> to vector<8x32xf32>
    %13 = arith.subf %5, %12 : vector<8x32xf32>
    %14 = arith.mulf %13, %13 : vector<8x32xf32>
    %cst_11 = arith.constant dense<0.000000e+00> : vector<8xf32>
    %15 = vector.multi_reduction <add>, %14, %cst_11 [1] : vector<8x32xf32> to vector<8xf32>
    %16 = vector.shape_cast %15 : vector<8xf32> to vector<8x1xf32>
    %cst_12 = arith.constant 3.200000e+01 : f32
    %17 = vector.broadcast %cst_12 : f32 to vector<8x1xf32>
    %18 = arith.divf %16, %17 : vector<8x1xf32>
    %19 = vector.broadcast %11 : vector<8x1xf32> to vector<8x32xf32>
    %20 = arith.subf %5, %19 : vector<8x32xf32>
    %cst_13 = arith.constant 9.99999974E-6 : f32
    %21 = vector.broadcast %cst_13 : f32 to vector<8x1xf32>
    %22 = arith.addf %18, %21 : vector<8x1xf32>
    %23 = math.rsqrt %22 : vector<8x1xf32>
    %24 = vector.broadcast %23 : vector<8x1xf32> to vector<8x32xf32>
    %25 = arith.mulf %20, %24 : vector<8x32xf32>
    %26 = vector.broadcast %6 : vector<1x32xf32> to vector<8x32xf32>
    %27 = arith.mulf %25, %26 : vector<8x32xf32>
    %28 = vector.broadcast %7 : vector<1x32xf32> to vector<8x32xf32>
    %29 = arith.addf %27, %28 : vector<8x32xf32>
    %c0_14 = arith.constant 0 : index
    %c0_15 = arith.constant 0 : index
    %c0_16 = arith.constant 0 : index
    %30 = vector.load %arg7[%c0_14, %c0_15, %c0_16] : memref<2x32x96xf32, #tpu.memory_space<vmem>>, vector<1x32x96xf32>
    %31 = vector.shape_cast %30 : vector<1x32x96xf32> to vector<32x96xf32>
    %cst_17 = arith.constant dense<0.000000e+00> : vector<8x96xf32>
    %32 = tpu.matmul %29, %31, %cst_17 {dimension_numbers = #tpu.dot_dimension_numbers<[1], [0], [0], [1], [0, 0, 1, 1], [], []>} : vector<8x32xf32>, vector<32x96xf32>, vector<8x96xf32> -> vector<8x96xf32>
    %c0_18 = arith.constant 0 : index
    %c0_19 = arith.constant 0 : index
    %c0_20 = arith.constant 0 : index
    %33 = vector.load %arg8[%c0_18, %c0_19, %c0_20] : memref<2x1x96xf32, #tpu.memory_space<vmem>>, vector<1x1x96xf32>
    %34 = vector.shape_cast %33 : vector<1x1x96xf32> to vector<1x96xf32>
    %35 = vector.broadcast %34 : vector<1x96xf32> to vector<8x96xf32>
    %36 = arith.addf %32, %35 : vector<8x96xf32>
    %37 = vector.extract_strided_slice %36 {offsets = [0, 0], sizes = [8, 8], strides = [1, 1]} : vector<8x96xf32> to vector<8x8xf32>
    %38 = vector.extract_strided_slice %36 {offsets = [0, 32], sizes = [8, 8], strides = [1, 1]} : vector<8x96xf32> to vector<8x8xf32>
    %39 = vector.extract_strided_slice %36 {offsets = [0, 64], sizes = [8, 8], strides = [1, 1]} : vector<8x96xf32> to vector<8x8xf32>
    %40 = tpu.transpose %38, [1, 0] : vector<8x8xf32> -> vector<8x8xf32>
    %cst_21 = arith.constant dense<0.000000e+00> : vector<8x8xf32>
    %41 = tpu.matmul %37, %40, %cst_21 {dimension_numbers = #tpu.dot_dimension_numbers<[1], [0], [0], [1], [0, 0, 1, 1], [], []>} : vector<8x8xf32>, vector<8x8xf32>, vector<8x8xf32> -> vector<8x8xf32>
    %c0_22 = arith.constant 0 : index
    %c0_23 = arith.constant 0 : index
    %42 = vector.load %arg2[%c0_22, %c0_23] : memref<8x8xf32, #tpu.memory_space<vmem>>, vector<8x8xf32>
    %43 = arith.addf %41, %42 : vector<8x8xf32>
    %cst_24 = arith.constant dense<0xFF800000> : vector<8xf32>
    %44 = vector.multi_reduction <maximumf>, %43, %cst_24 [1] : vector<8x8xf32> to vector<8xf32>
    %45 = vector.shape_cast %44 : vector<8xf32> to vector<8x1xf32>
    %46 = vector.broadcast %45 : vector<8x1xf32> to vector<8x8xf32>
    %47 = arith.subf %43, %46 : vector<8x8xf32>
    %48 = math.exp %47 : vector<8x8xf32>
    %cst_25 = arith.constant dense<0.000000e+00> : vector<8xf32>
    %49 = vector.multi_reduction <add>, %48, %cst_25 [1] : vector<8x8xf32> to vector<8xf32>
    %50 = vector.shape_cast %49 : vector<8xf32> to vector<8x1xf32>
    %51 = tpu.reciprocal %50 : vector<8x1xf32> -> vector<8x1xf32>
    %52 = vector.broadcast %51 : vector<8x1xf32> to vector<8x8xf32>
    %53 = arith.mulf %48, %52 : vector<8x8xf32>
    %cst_26 = arith.constant dense<0.000000e+00> : vector<8x8xf32>
    %54 = tpu.matmul %53, %39, %cst_26 {dimension_numbers = #tpu.dot_dimension_numbers<[1], [0], [0], [1], [0, 0, 1, 1], [], []>} : vector<8x8xf32>, vector<8x8xf32>, vector<8x8xf32> -> vector<8x8xf32>
    %55 = vector.extract_strided_slice %36 {offsets = [0, 8], sizes = [8, 8], strides = [1, 1]} : vector<8x96xf32> to vector<8x8xf32>
    %56 = vector.extract_strided_slice %36 {offsets = [0, 40], sizes = [8, 8], strides = [1, 1]} : vector<8x96xf32> to vector<8x8xf32>
    %57 = vector.extract_strided_slice %36 {offsets = [0, 72], sizes = [8, 8], strides = [1, 1]} : vector<8x96xf32> to vector<8x8xf32>
    %58 = tpu.transpose %56, [1, 0] : vector<8x8xf32> -> vector<8x8xf32>
    %cst_27 = arith.constant dense<0.000000e+00> : vector<8x8xf32>
    %59 = tpu.matmul %55, %58, %cst_27 {dimension_numbers = #tpu.dot_dimension_numbers<[1], [0], [0], [1], [0, 0, 1, 1], [], []>} : vector<8x8xf32>, vector<8x8xf32>, vector<8x8xf32> -> vector<8x8xf32>
    %c0_28 = arith.constant 0 : index
    %c0_29 = arith.constant 0 : index
    %60 = vector.load %arg2[%c0_28, %c0_29] : memref<8x8xf32, #tpu.memory_space<vmem>>, vector<8x8xf32>
    %61 = arith.addf %59, %60 : vector<8x8xf32>
    %cst_30 = arith.constant dense<0xFF800000> : vector<8xf32>
    %62 = vector.multi_reduction <maximumf>, %61, %cst_30 [1] : vector<8x8xf32> to vector<8xf32>
    %63 = vector.shape_cast %62 : vector<8xf32> to vector<8x1xf32>
    %64 = vector.broadcast %63 : vector<8x1xf32> to vector<8x8xf32>
    %65 = arith.subf %61, %64 : vector<8x8xf32>
    %66 = math.exp %65 : vector<8x8xf32>
    %cst_31 = arith.constant dense<0.000000e+00> : vector<8xf32>
    %67 = vector.multi_reduction <add>, %66, %cst_31 [1] : vector<8x8xf32> to vector<8xf32>
    %68 = vector.shape_cast %67 : vector<8xf32> to vector<8x1xf32>
    %69 = tpu.reciprocal %68 : vector<8x1xf32> -> vector<8x1xf32>
    %70 = vector.broadcast %69 : vector<8x1xf32> to vector<8x8xf32>
    %71 = arith.mulf %66, %70 : vector<8x8xf32>
    %cst_32 = arith.constant dense<0.000000e+00> : vector<8x8xf32>
    %72 = tpu.matmul %71, %57, %cst_32 {dimension_numbers = #tpu.dot_dimension_numbers<[1], [0], [0], [1], [0, 0, 1, 1], [], []>} : vector<8x8xf32>, vector<8x8xf32>, vector<8x8xf32> -> vector<8x8xf32>
    %73 = vector.extract_strided_slice %36 {offsets = [0, 16], sizes = [8, 8], strides = [1, 1]} : vector<8x96xf32> to vector<8x8xf32>
    %74 = vector.extract_strided_slice %36 {offsets = [0, 48], sizes = [8, 8], strides = [1, 1]} : vector<8x96xf32> to vector<8x8xf32>
    %75 = vector.extract_strided_slice %36 {offsets = [0, 80], sizes = [8, 8], strides = [1, 1]} : vector<8x96xf32> to vector<8x8xf32>
    %76 = tpu.transpose %74, [1, 0] : vector<8x8xf32> -> vector<8x8xf32>
    %cst_33 = arith.constant dense<0.000000e+00> : vector<8x8xf32>
    %77 = tpu.matmul %73, %76, %cst_33 {dimension_numbers = #tpu.dot_dimension_numbers<[1], [0], [0], [1], [0, 0, 1, 1], [], []>} : vector<8x8xf32>, vector<8x8xf32>, vector<8x8xf32> -> vector<8x8xf32>
    %c0_34 = arith.constant 0 : index
    %c0_35 = arith.constant 0 : index
    %78 = vector.load %arg2[%c0_34, %c0_35] : memref<8x8xf32, #tpu.memory_space<vmem>>, vector<8x8xf32>
    %79 = arith.addf %77, %78 : vector<8x8xf32>
    %cst_36 = arith.constant dense<0xFF800000> : vector<8xf32>
    %80 = vector.multi_reduction <maximumf>, %79, %cst_36 [1] : vector<8x8xf32> to vector<8xf32>
    %81 = vector.shape_cast %80 : vector<8xf32> to vector<8x1xf32>
    %82 = vector.broadcast %81 : vector<8x1xf32> to vector<8x8xf32>
    %83 = arith.subf %79, %82 : vector<8x8xf32>
    %84 = math.exp %83 : vector<8x8xf32>
    %cst_37 = arith.constant dense<0.000000e+00> : vector<8xf32>
    %85 = vector.multi_reduction <add>, %84, %cst_37 [1] : vector<8x8xf32> to vector<8xf32>
    %86 = vector.shape_cast %85 : vector<8xf32> to vector<8x1xf32>
    %87 = tpu.reciprocal %86 : vector<8x1xf32> -> vector<8x1xf32>
    %88 = vector.broadcast %87 : vector<8x1xf32> to vector<8x8xf32>
    %89 = arith.mulf %84, %88 : vector<8x8xf32>
    %cst_38 = arith.constant dense<0.000000e+00> : vector<8x8xf32>
    %90 = tpu.matmul %89, %75, %cst_38 {dimension_numbers = #tpu.dot_dimension_numbers<[1], [0], [0], [1], [0, 0, 1, 1], [], []>} : vector<8x8xf32>, vector<8x8xf32>, vector<8x8xf32> -> vector<8x8xf32>
    %91 = vector.extract_strided_slice %36 {offsets = [0, 24], sizes = [8, 8], strides = [1, 1]} : vector<8x96xf32> to vector<8x8xf32>
    %92 = vector.extract_strided_slice %36 {offsets = [0, 56], sizes = [8, 8], strides = [1, 1]} : vector<8x96xf32> to vector<8x8xf32>
    %93 = vector.extract_strided_slice %36 {offsets = [0, 88], sizes = [8, 8], strides = [1, 1]} : vector<8x96xf32> to vector<8x8xf32>
    %94 = tpu.transpose %92, [1, 0] : vector<8x8xf32> -> vector<8x8xf32>
    %cst_39 = arith.constant dense<0.000000e+00> : vector<8x8xf32>
    %95 = tpu.matmul %91, %94, %cst_39 {dimension_numbers = #tpu.dot_dimension_numbers<[1], [0], [0], [1], [0, 0, 1, 1], [], []>} : vector<8x8xf32>, vector<8x8xf32>, vector<8x8xf32> -> vector<8x8xf32>
    %c0_40 = arith.constant 0 : index
    %c0_41 = arith.constant 0 : index
    %96 = vector.load %arg2[%c0_40, %c0_41] : memref<8x8xf32, #tpu.memory_space<vmem>>, vector<8x8xf32>
    %97 = arith.addf %95, %96 : vector<8x8xf32>
    %cst_42 = arith.constant dense<0xFF800000> : vector<8xf32>
    %98 = vector.multi_reduction <maximumf>, %97, %cst_42 [1] : vector<8x8xf32> to vector<8xf32>
    %99 = vector.shape_cast %98 : vector<8xf32> to vector<8x1xf32>
    %100 = vector.broadcast %99 : vector<8x1xf32> to vector<8x8xf32>
    %101 = arith.subf %97, %100 : vector<8x8xf32>
    %102 = math.exp %101 : vector<8x8xf32>
    %cst_43 = arith.constant dense<0.000000e+00> : vector<8xf32>
    %103 = vector.multi_reduction <add>, %102, %cst_43 [1] : vector<8x8xf32> to vector<8xf32>
    %104 = vector.shape_cast %103 : vector<8xf32> to vector<8x1xf32>
    %105 = tpu.reciprocal %104 : vector<8x1xf32> -> vector<8x1xf32>
    %106 = vector.broadcast %105 : vector<8x1xf32> to vector<8x8xf32>
    %107 = arith.mulf %102, %106 : vector<8x8xf32>
    %cst_44 = arith.constant dense<0.000000e+00> : vector<8x8xf32>
    %108 = tpu.matmul %107, %93, %cst_44 {dimension_numbers = #tpu.dot_dimension_numbers<[1], [0], [0], [1], [0, 0, 1, 1], [], []>} : vector<8x8xf32>, vector<8x8xf32>, vector<8x8xf32> -> vector<8x8xf32>
    %109 = tpu.concatenate %54, %72, %90, %108 in 1 : vector<8x8xf32>, vector<8x8xf32>, vector<8x8xf32>, vector<8x8xf32> -> vector<8x32xf32>
    %c0_45 = arith.constant 0 : index
    %c0_46 = arith.constant 0 : index
    %c0_47 = arith.constant 0 : index
    %110 = vector.load %arg9[%c0_45, %c0_46, %c0_47] : memref<2x32x32xf32, #tpu.memory_space<vmem>>, vector<1x32x32xf32>
    %111 = vector.shape_cast %110 : vector<1x32x32xf32> to vector<32x32xf32>
    %cst_48 = arith.constant dense<0.000000e+00> : vector<8x32xf32>
    %112 = tpu.matmul %109, %111, %cst_48 {dimension_numbers = #tpu.dot_dimension_numbers<[1], [0], [0], [1], [0, 0, 1, 1], [], []>} : vector<8x32xf32>, vector<32x32xf32>, vector<8x32xf32> -> vector<8x32xf32>
    %c0_49 = arith.constant 0 : index
    %c0_50 = arith.constant 0 : index
    %c0_51 = arith.constant 0 : index
    %113 = vector.load %arg10[%c0_49, %c0_50, %c0_51] : memref<2x1x32xf32, #tpu.memory_space<vmem>>, vector<1x1x32xf32>
    %114 = vector.shape_cast %113 : vector<1x1x32xf32> to vector<1x32xf32>
    %115 = vector.broadcast %114 : vector<1x32xf32> to vector<8x32xf32>
    %116 = arith.addf %112, %115 : vector<8x32xf32>
    %117 = arith.addf %29, %116 : vector<8x32xf32>
    %c0_52 = arith.constant 0 : index
    %c0_53 = arith.constant 0 : index
    %c0_54 = arith.constant 0 : index
    %118 = vector.load %arg11[%c0_52, %c0_53, %c0_54] : memref<2x1x32xf32, #tpu.memory_space<vmem>>, vector<1x1x32xf32>
    %119 = vector.shape_cast %118 : vector<1x1x32xf32> to vector<1x32xf32>
    %c0_55 = arith.constant 0 : index
    %c0_56 = arith.constant 0 : index
    %c0_57 = arith.constant 0 : index
    %120 = vector.load %arg12[%c0_55, %c0_56, %c0_57] : memref<2x1x32xf32, #tpu.memory_space<vmem>>, vector<1x1x32xf32>
    %121 = vector.shape_cast %120 : vector<1x1x32xf32> to vector<1x32xf32>
    %cst_58 = arith.constant dense<0.000000e+00> : vector<8xf32>
    %122 = vector.multi_reduction <add>, %117, %cst_58 [1] : vector<8x32xf32> to vector<8xf32>
    %123 = vector.shape_cast %122 : vector<8xf32> to vector<8x1xf32>
    %cst_59 = arith.constant 3.200000e+01 : f32
    %124 = vector.broadcast %cst_59 : f32 to vector<8x1xf32>
    %125 = arith.divf %123, %124 : vector<8x1xf32>
    %126 = vector.broadcast %125 : vector<8x1xf32> to vector<8x32xf32>
    %127 = arith.subf %117, %126 : vector<8x32xf32>
    %128 = arith.mulf %127, %127 : vector<8x32xf32>
    %cst_60 = arith.constant dense<0.000000e+00> : vector<8xf32>
    %129 = vector.multi_reduction <add>, %128, %cst_60 [1] : vector<8x32xf32> to vector<8xf32>
    %130 = vector.shape_cast %129 : vector<8xf32> to vector<8x1xf32>
    %cst_61 = arith.constant 3.200000e+01 : f32
    %131 = vector.broadcast %cst_61 : f32 to vector<8x1xf32>
    %132 = arith.divf %130, %131 : vector<8x1xf32>
    %133 = vector.broadcast %125 : vector<8x1xf32> to vector<8x32xf32>
    %134 = arith.subf %117, %133 : vector<8x32xf32>
    %cst_62 = arith.constant 9.99999974E-6 : f32
    %135 = vector.broadcast %cst_62 : f32 to vector<8x1xf32>
    %136 = arith.addf %132, %135 : vector<8x1xf32>
    %137 = math.rsqrt %136 : vector<8x1xf32>
    %138 = vector.broadcast %137 : vector<8x1xf32> to vector<8x32xf32>
    %139 = arith.mulf %134, %138 : vector<8x32xf32>
    %140 = vector.broadcast %119 : vector<1x32xf32> to vector<8x32xf32>
    %141 = arith.mulf %139, %140 : vector<8x32xf32>
    %142 = vector.broadcast %121 : vector<1x32xf32> to vector<8x32xf32>
    %143 = arith.addf %141, %142 : vector<8x32xf32>
    %c0_63 = arith.constant 0 : index
    %c0_64 = arith.constant 0 : index
    %c0_65 = arith.constant 0 : index
    %144 = vector.load %arg13[%c0_63, %c0_64, %c0_65] : memref<2x32x64xf32, #tpu.memory_space<vmem>>, vector<1x32x64xf32>
    %145 = vector.shape_cast %144 : vector<1x32x64xf32> to vector<32x64xf32>
    %cst_66 = arith.constant dense<0.000000e+00> : vector<8x64xf32>
    %146 = tpu.matmul %143, %145, %cst_66 {dimension_numbers = #tpu.dot_dimension_numbers<[1], [0], [0], [1], [0, 0, 1, 1], [], []>} : vector<8x32xf32>, vector<32x64xf32>, vector<8x64xf32> -> vector<8x64xf32>
    %c0_67 = arith.constant 0 : index
    %c0_68 = arith.constant 0 : index
    %c0_69 = arith.constant 0 : index
    %147 = vector.load %arg14[%c0_67, %c0_68, %c0_69] : memref<2x1x64xf32, #tpu.memory_space<vmem>>, vector<1x1x64xf32>
    %148 = vector.shape_cast %147 : vector<1x1x64xf32> to vector<1x64xf32>
    %149 = vector.broadcast %148 : vector<1x64xf32> to vector<8x64xf32>
    %150 = arith.addf %146, %149 : vector<8x64xf32>
    %cst_70 = arith.constant 0.000000e+00 : f32
    %151 = vector.broadcast %cst_70 : f32 to vector<8x64xf32>
    %152 = arith.maximumf %150, %151 : vector<8x64xf32>
    %c0_71 = arith.constant 0 : index
    %c0_72 = arith.constant 0 : index
    %c0_73 = arith.constant 0 : index
    %153 = vector.load %arg15[%c0_71, %c0_72, %c0_73] : memref<2x64x32xf32, #tpu.memory_space<vmem>>, vector<1x64x32xf32>
    %154 = vector.shape_cast %153 : vector<1x64x32xf32> to vector<64x32xf32>
    %cst_74 = arith.constant dense<0.000000e+00> : vector<8x32xf32>
    %155 = tpu.matmul %152, %154, %cst_74 {dimension_numbers = #tpu.dot_dimension_numbers<[1], [0], [0], [1], [0, 0, 1, 1], [], []>} : vector<8x64xf32>, vector<64x32xf32>, vector<8x32xf32> -> vector<8x32xf32>
    %c0_75 = arith.constant 0 : index
    %c0_76 = arith.constant 0 : index
    %c0_77 = arith.constant 0 : index
    %156 = vector.load %arg16[%c0_75, %c0_76, %c0_77] : memref<2x1x32xf32, #tpu.memory_space<vmem>>, vector<1x1x32xf32>
    %157 = vector.shape_cast %156 : vector<1x1x32xf32> to vector<1x32xf32>
    %158 = vector.broadcast %157 : vector<1x32xf32> to vector<8x32xf32>
    %159 = arith.addf %155, %158 : vector<8x32xf32>
    %160 = arith.addf %143, %159 : vector<8x32xf32>
    %c0_78 = arith.constant 0 : index
    %c0_79 = arith.constant 0 : index
    %c0_80 = arith.constant 0 : index
    %161 = vector.load %arg17[%c0_78, %c0_79, %c0_80] : memref<2x1x32xf32, #tpu.memory_space<vmem>>, vector<1x1x32xf32>
    %162 = vector.shape_cast %161 : vector<1x1x32xf32> to vector<1x32xf32>
    %c0_81 = arith.constant 0 : index
    %c0_82 = arith.constant 0 : index
    %c0_83 = arith.constant 0 : index
    %163 = vector.load %arg18[%c0_81, %c0_82, %c0_83] : memref<2x1x32xf32, #tpu.memory_space<vmem>>, vector<1x1x32xf32>
    %164 = vector.shape_cast %163 : vector<1x1x32xf32> to vector<1x32xf32>
    %cst_84 = arith.constant dense<0.000000e+00> : vector<8xf32>
    %165 = vector.multi_reduction <add>, %160, %cst_84 [1] : vector<8x32xf32> to vector<8xf32>
    %166 = vector.shape_cast %165 : vector<8xf32> to vector<8x1xf32>
    %cst_85 = arith.constant 3.200000e+01 : f32
    %167 = vector.broadcast %cst_85 : f32 to vector<8x1xf32>
    %168 = arith.divf %166, %167 : vector<8x1xf32>
    %169 = vector.broadcast %168 : vector<8x1xf32> to vector<8x32xf32>
    %170 = arith.subf %160, %169 : vector<8x32xf32>
    %171 = arith.mulf %170, %170 : vector<8x32xf32>
    %cst_86 = arith.constant dense<0.000000e+00> : vector<8xf32>
    %172 = vector.multi_reduction <add>, %171, %cst_86 [1] : vector<8x32xf32> to vector<8xf32>
    %173 = vector.shape_cast %172 : vector<8xf32> to vector<8x1xf32>
    %cst_87 = arith.constant 3.200000e+01 : f32
    %174 = vector.broadcast %cst_87 : f32 to vector<8x1xf32>
    %175 = arith.divf %173, %174 : vector<8x1xf32>
    %176 = vector.broadcast %168 : vector<8x1xf32> to vector<8x32xf32>
    %177 = arith.subf %160, %176 : vector<8x32xf32>
    %cst_88 = arith.constant 9.99999974E-6 : f32
    %178 = vector.broadcast %cst_88 : f32 to vector<8x1xf32>
    %179 = arith.addf %175, %178 : vector<8x1xf32>
    %180 = math.rsqrt %179 : vector<8x1xf32>
    %181 = vector.broadcast %180 : vector<8x1xf32> to vector<8x32xf32>
    %182 = arith.mulf %177, %181 : vector<8x32xf32>
    %183 = vector.broadcast %162 : vector<1x32xf32> to vector<8x32xf32>
    %184 = arith.mulf %182, %183 : vector<8x32xf32>
    %185 = vector.broadcast %164 : vector<1x32xf32> to vector<8x32xf32>
    %186 = arith.addf %184, %185 : vector<8x32xf32>
    %c1 = arith.constant 1 : index
    %c0_89 = arith.constant 0 : index
    %c0_90 = arith.constant 0 : index
    %187 = vector.load %arg7[%c1, %c0_89, %c0_90] : memref<2x32x96xf32, #tpu.memory_space<vmem>>, vector<1x32x96xf32>
    %188 = vector.shape_cast %187 : vector<1x32x96xf32> to vector<32x96xf32>
    %cst_91 = arith.constant dense<0.000000e+00> : vector<8x96xf32>
    %189 = tpu.matmul %186, %188, %cst_91 {dimension_numbers = #tpu.dot_dimension_numbers<[1], [0], [0], [1], [0, 0, 1, 1], [], []>} : vector<8x32xf32>, vector<32x96xf32>, vector<8x96xf32> -> vector<8x96xf32>
    %c1_92 = arith.constant 1 : index
    %c0_93 = arith.constant 0 : index
    %c0_94 = arith.constant 0 : index
    %190 = vector.load %arg8[%c1_92, %c0_93, %c0_94] : memref<2x1x96xf32, #tpu.memory_space<vmem>>, vector<1x1x96xf32>
    %191 = vector.shape_cast %190 : vector<1x1x96xf32> to vector<1x96xf32>
    %192 = vector.broadcast %191 : vector<1x96xf32> to vector<8x96xf32>
    %193 = arith.addf %189, %192 : vector<8x96xf32>
    %194 = vector.extract_strided_slice %193 {offsets = [0, 0], sizes = [8, 8], strides = [1, 1]} : vector<8x96xf32> to vector<8x8xf32>
    %195 = vector.extract_strided_slice %193 {offsets = [0, 32], sizes = [8, 8], strides = [1, 1]} : vector<8x96xf32> to vector<8x8xf32>
    %196 = vector.extract_strided_slice %193 {offsets = [0, 64], sizes = [8, 8], strides = [1, 1]} : vector<8x96xf32> to vector<8x8xf32>
    %197 = tpu.transpose %195, [1, 0] : vector<8x8xf32> -> vector<8x8xf32>
    %cst_95 = arith.constant dense<0.000000e+00> : vector<8x8xf32>
    %198 = tpu.matmul %194, %197, %cst_95 {dimension_numbers = #tpu.dot_dimension_numbers<[1], [0], [0], [1], [0, 0, 1, 1], [], []>} : vector<8x8xf32>, vector<8x8xf32>, vector<8x8xf32> -> vector<8x8xf32>
    %c0_96 = arith.constant 0 : index
    %c0_97 = arith.constant 0 : index
    %199 = vector.load %arg2[%c0_96, %c0_97] : memref<8x8xf32, #tpu.memory_space<vmem>>, vector<8x8xf32>
    %200 = arith.addf %198, %199 : vector<8x8xf32>
    %cst_98 = arith.constant dense<0xFF800000> : vector<8xf32>
    %201 = vector.multi_reduction <maximumf>, %200, %cst_98 [1] : vector<8x8xf32> to vector<8xf32>
    %202 = vector.shape_cast %201 : vector<8xf32> to vector<8x1xf32>
    %203 = vector.broadcast %202 : vector<8x1xf32> to vector<8x8xf32>
    %204 = arith.subf %200, %203 : vector<8x8xf32>
    %205 = math.exp %204 : vector<8x8xf32>
    %cst_99 = arith.constant dense<0.000000e+00> : vector<8xf32>
    %206 = vector.multi_reduction <add>, %205, %cst_99 [1] : vector<8x8xf32> to vector<8xf32>
    %207 = vector.shape_cast %206 : vector<8xf32> to vector<8x1xf32>
    %208 = tpu.reciprocal %207 : vector<8x1xf32> -> vector<8x1xf32>
    %209 = vector.broadcast %208 : vector<8x1xf32> to vector<8x8xf32>
    %210 = arith.mulf %205, %209 : vector<8x8xf32>
    %cst_100 = arith.constant dense<0.000000e+00> : vector<8x8xf32>
    %211 = tpu.matmul %210, %196, %cst_100 {dimension_numbers = #tpu.dot_dimension_numbers<[1], [0], [0], [1], [0, 0, 1, 1], [], []>} : vector<8x8xf32>, vector<8x8xf32>, vector<8x8xf32> -> vector<8x8xf32>
    %212 = vector.extract_strided_slice %193 {offsets = [0, 8], sizes = [8, 8], strides = [1, 1]} : vector<8x96xf32> to vector<8x8xf32>
    %213 = vector.extract_strided_slice %193 {offsets = [0, 40], sizes = [8, 8], strides = [1, 1]} : vector<8x96xf32> to vector<8x8xf32>
    %214 = vector.extract_strided_slice %193 {offsets = [0, 72], sizes = [8, 8], strides = [1, 1]} : vector<8x96xf32> to vector<8x8xf32>
    %215 = tpu.transpose %213, [1, 0] : vector<8x8xf32> -> vector<8x8xf32>
    %cst_101 = arith.constant dense<0.000000e+00> : vector<8x8xf32>
    %216 = tpu.matmul %212, %215, %cst_101 {dimension_numbers = #tpu.dot_dimension_numbers<[1], [0], [0], [1], [0, 0, 1, 1], [], []>} : vector<8x8xf32>, vector<8x8xf32>, vector<8x8xf32> -> vector<8x8xf32>
    %c0_102 = arith.constant 0 : index
    %c0_103 = arith.constant 0 : index
    %217 = vector.load %arg2[%c0_102, %c0_103] : memref<8x8xf32, #tpu.memory_space<vmem>>, vector<8x8xf32>
    %218 = arith.addf %216, %217 : vector<8x8xf32>
    %cst_104 = arith.constant dense<0xFF800000> : vector<8xf32>
    %219 = vector.multi_reduction <maximumf>, %218, %cst_104 [1] : vector<8x8xf32> to vector<8xf32>
    %220 = vector.shape_cast %219 : vector<8xf32> to vector<8x1xf32>
    %221 = vector.broadcast %220 : vector<8x1xf32> to vector<8x8xf32>
    %222 = arith.subf %218, %221 : vector<8x8xf32>
    %223 = math.exp %222 : vector<8x8xf32>
    %cst_105 = arith.constant dense<0.000000e+00> : vector<8xf32>
    %224 = vector.multi_reduction <add>, %223, %cst_105 [1] : vector<8x8xf32> to vector<8xf32>
    %225 = vector.shape_cast %224 : vector<8xf32> to vector<8x1xf32>
    %226 = tpu.reciprocal %225 : vector<8x1xf32> -> vector<8x1xf32>
    %227 = vector.broadcast %226 : vector<8x1xf32> to vector<8x8xf32>
    %228 = arith.mulf %223, %227 : vector<8x8xf32>
    %cst_106 = arith.constant dense<0.000000e+00> : vector<8x8xf32>
    %229 = tpu.matmul %228, %214, %cst_106 {dimension_numbers = #tpu.dot_dimension_numbers<[1], [0], [0], [1], [0, 0, 1, 1], [], []>} : vector<8x8xf32>, vector<8x8xf32>, vector<8x8xf32> -> vector<8x8xf32>
    %230 = vector.extract_strided_slice %193 {offsets = [0, 16], sizes = [8, 8], strides = [1, 1]} : vector<8x96xf32> to vector<8x8xf32>
    %231 = vector.extract_strided_slice %193 {offsets = [0, 48], sizes = [8, 8], strides = [1, 1]} : vector<8x96xf32> to vector<8x8xf32>
    %232 = vector.extract_strided_slice %193 {offsets = [0, 80], sizes = [8, 8], strides = [1, 1]} : vector<8x96xf32> to vector<8x8xf32>
    %233 = tpu.transpose %231, [1, 0] : vector<8x8xf32> -> vector<8x8xf32>
    %cst_107 = arith.constant dense<0.000000e+00> : vector<8x8xf32>
    %234 = tpu.matmul %230, %233, %cst_107 {dimension_numbers = #tpu.dot_dimension_numbers<[1], [0], [0], [1], [0, 0, 1, 1], [], []>} : vector<8x8xf32>, vector<8x8xf32>, vector<8x8xf32> -> vector<8x8xf32>
    %c0_108 = arith.constant 0 : index
    %c0_109 = arith.constant 0 : index
    %235 = vector.load %arg2[%c0_108, %c0_109] : memref<8x8xf32, #tpu.memory_space<vmem>>, vector<8x8xf32>
    %236 = arith.addf %234, %235 : vector<8x8xf32>
    %cst_110 = arith.constant dense<0xFF800000> : vector<8xf32>
    %237 = vector.multi_reduction <maximumf>, %236, %cst_110 [1] : vector<8x8xf32> to vector<8xf32>
    %238 = vector.shape_cast %237 : vector<8xf32> to vector<8x1xf32>
    %239 = vector.broadcast %238 : vector<8x1xf32> to vector<8x8xf32>
    %240 = arith.subf %236, %239 : vector<8x8xf32>
    %241 = math.exp %240 : vector<8x8xf32>
    %cst_111 = arith.constant dense<0.000000e+00> : vector<8xf32>
    %242 = vector.multi_reduction <add>, %241, %cst_111 [1] : vector<8x8xf32> to vector<8xf32>
    %243 = vector.shape_cast %242 : vector<8xf32> to vector<8x1xf32>
    %244 = tpu.reciprocal %243 : vector<8x1xf32> -> vector<8x1xf32>
    %245 = vector.broadcast %244 : vector<8x1xf32> to vector<8x8xf32>
    %246 = arith.mulf %241, %245 : vector<8x8xf32>
    %cst_112 = arith.constant dense<0.000000e+00> : vector<8x8xf32>
    %247 = tpu.matmul %246, %232, %cst_112 {dimension_numbers = #tpu.dot_dimension_numbers<[1], [0], [0], [1], [0, 0, 1, 1], [], []>} : vector<8x8xf32>, vector<8x8xf32>, vector<8x8xf32> -> vector<8x8xf32>
    %248 = vector.extract_strided_slice %193 {offsets = [0, 24], sizes = [8, 8], strides = [1, 1]} : vector<8x96xf32> to vector<8x8xf32>
    %249 = vector.extract_strided_slice %193 {offsets = [0, 56], sizes = [8, 8], strides = [1, 1]} : vector<8x96xf32> to vector<8x8xf32>
    %250 = vector.extract_strided_slice %193 {offsets = [0, 88], sizes = [8, 8], strides = [1, 1]} : vector<8x96xf32> to vector<8x8xf32>
    %251 = tpu.transpose %249, [1, 0] : vector<8x8xf32> -> vector<8x8xf32>
    %cst_113 = arith.constant dense<0.000000e+00> : vector<8x8xf32>
    %252 = tpu.matmul %248, %251, %cst_113 {dimension_numbers = #tpu.dot_dimension_numbers<[1], [0], [0], [1], [0, 0, 1, 1], [], []>} : vector<8x8xf32>, vector<8x8xf32>, vector<8x8xf32> -> vector<8x8xf32>
    %c0_114 = arith.constant 0 : index
    %c0_115 = arith.constant 0 : index
    %253 = vector.load %arg2[%c0_114, %c0_115] : memref<8x8xf32, #tpu.memory_space<vmem>>, vector<8x8xf32>
    %254 = arith.addf %252, %253 : vector<8x8xf32>
    %cst_116 = arith.constant dense<0xFF800000> : vector<8xf32>
    %255 = vector.multi_reduction <maximumf>, %254, %cst_116 [1] : vector<8x8xf32> to vector<8xf32>
    %256 = vector.shape_cast %255 : vector<8xf32> to vector<8x1xf32>
    %257 = vector.broadcast %256 : vector<8x1xf32> to vector<8x8xf32>
    %258 = arith.subf %254, %257 : vector<8x8xf32>
    %259 = math.exp %258 : vector<8x8xf32>
    %cst_117 = arith.constant dense<0.000000e+00> : vector<8xf32>
    %260 = vector.multi_reduction <add>, %259, %cst_117 [1] : vector<8x8xf32> to vector<8xf32>
    %261 = vector.shape_cast %260 : vector<8xf32> to vector<8x1xf32>
    %262 = tpu.reciprocal %261 : vector<8x1xf32> -> vector<8x1xf32>
    %263 = vector.broadcast %262 : vector<8x1xf32> to vector<8x8xf32>
    %264 = arith.mulf %259, %263 : vector<8x8xf32>
    %cst_118 = arith.constant dense<0.000000e+00> : vector<8x8xf32>
    %265 = tpu.matmul %264, %250, %cst_118 {dimension_numbers = #tpu.dot_dimension_numbers<[1], [0], [0], [1], [0, 0, 1, 1], [], []>} : vector<8x8xf32>, vector<8x8xf32>, vector<8x8xf32> -> vector<8x8xf32>
    %266 = tpu.concatenate %211, %229, %247, %265 in 1 : vector<8x8xf32>, vector<8x8xf32>, vector<8x8xf32>, vector<8x8xf32> -> vector<8x32xf32>
    %c1_119 = arith.constant 1 : index
    %c0_120 = arith.constant 0 : index
    %c0_121 = arith.constant 0 : index
    %267 = vector.load %arg9[%c1_119, %c0_120, %c0_121] : memref<2x32x32xf32, #tpu.memory_space<vmem>>, vector<1x32x32xf32>
    %268 = vector.shape_cast %267 : vector<1x32x32xf32> to vector<32x32xf32>
    %cst_122 = arith.constant dense<0.000000e+00> : vector<8x32xf32>
    %269 = tpu.matmul %266, %268, %cst_122 {dimension_numbers = #tpu.dot_dimension_numbers<[1], [0], [0], [1], [0, 0, 1, 1], [], []>} : vector<8x32xf32>, vector<32x32xf32>, vector<8x32xf32> -> vector<8x32xf32>
    %c1_123 = arith.constant 1 : index
    %c0_124 = arith.constant 0 : index
    %c0_125 = arith.constant 0 : index
    %270 = vector.load %arg10[%c1_123, %c0_124, %c0_125] : memref<2x1x32xf32, #tpu.memory_space<vmem>>, vector<1x1x32xf32>
    %271 = vector.shape_cast %270 : vector<1x1x32xf32> to vector<1x32xf32>
    %272 = vector.broadcast %271 : vector<1x32xf32> to vector<8x32xf32>
    %273 = arith.addf %269, %272 : vector<8x32xf32>
    %274 = arith.addf %186, %273 : vector<8x32xf32>
    %c1_126 = arith.constant 1 : index
    %c0_127 = arith.constant 0 : index
    %c0_128 = arith.constant 0 : index
    %275 = vector.load %arg11[%c1_126, %c0_127, %c0_128] : memref<2x1x32xf32, #tpu.memory_space<vmem>>, vector<1x1x32xf32>
    %276 = vector.shape_cast %275 : vector<1x1x32xf32> to vector<1x32xf32>
    %c1_129 = arith.constant 1 : index
    %c0_130 = arith.constant 0 : index
    %c0_131 = arith.constant 0 : index
    %277 = vector.load %arg12[%c1_129, %c0_130, %c0_131] : memref<2x1x32xf32, #tpu.memory_space<vmem>>, vector<1x1x32xf32>
    %278 = vector.shape_cast %277 : vector<1x1x32xf32> to vector<1x32xf32>
    %cst_132 = arith.constant dense<0.000000e+00> : vector<8xf32>
    %279 = vector.multi_reduction <add>, %274, %cst_132 [1] : vector<8x32xf32> to vector<8xf32>
    %280 = vector.shape_cast %279 : vector<8xf32> to vector<8x1xf32>
    %cst_133 = arith.constant 3.200000e+01 : f32
    %281 = vector.broadcast %cst_133 : f32 to vector<8x1xf32>
    %282 = arith.divf %280, %281 : vector<8x1xf32>
    %283 = vector.broadcast %282 : vector<8x1xf32> to vector<8x32xf32>
    %284 = arith.subf %274, %283 : vector<8x32xf32>
    %285 = arith.mulf %284, %284 : vector<8x32xf32>
    %cst_134 = arith.constant dense<0.000000e+00> : vector<8xf32>
    %286 = vector.multi_reduction <add>, %285, %cst_134 [1] : vector<8x32xf32> to vector<8xf32>
    %287 = vector.shape_cast %286 : vector<8xf32> to vector<8x1xf32>
    %cst_135 = arith.constant 3.200000e+01 : f32
    %288 = vector.broadcast %cst_135 : f32 to vector<8x1xf32>
    %289 = arith.divf %287, %288 : vector<8x1xf32>
    %290 = vector.broadcast %282 : vector<8x1xf32> to vector<8x32xf32>
    %291 = arith.subf %274, %290 : vector<8x32xf32>
    %cst_136 = arith.constant 9.99999974E-6 : f32
    %292 = vector.broadcast %cst_136 : f32 to vector<8x1xf32>
    %293 = arith.addf %289, %292 : vector<8x1xf32>
    %294 = math.rsqrt %293 : vector<8x1xf32>
    %295 = vector.broadcast %294 : vector<8x1xf32> to vector<8x32xf32>
    %296 = arith.mulf %291, %295 : vector<8x32xf32>
    %297 = vector.broadcast %276 : vector<1x32xf32> to vector<8x32xf32>
    %298 = arith.mulf %296, %297 : vector<8x32xf32>
    %299 = vector.broadcast %278 : vector<1x32xf32> to vector<8x32xf32>
    %300 = arith.addf %298, %299 : vector<8x32xf32>
    %c1_137 = arith.constant 1 : index
    %c0_138 = arith.constant 0 : index
    %c0_139 = arith.constant 0 : index
    %301 = vector.load %arg13[%c1_137, %c0_138, %c0_139] : memref<2x32x64xf32, #tpu.memory_space<vmem>>, vector<1x32x64xf32>
    %302 = vector.shape_cast %301 : vector<1x32x64xf32> to vector<32x64xf32>
    %cst_140 = arith.constant dense<0.000000e+00> : vector<8x64xf32>
    %303 = tpu.matmul %300, %302, %cst_140 {dimension_numbers = #tpu.dot_dimension_numbers<[1], [0], [0], [1], [0, 0, 1, 1], [], []>} : vector<8x32xf32>, vector<32x64xf32>, vector<8x64xf32> -> vector<8x64xf32>
    %c1_141 = arith.constant 1 : index
    %c0_142 = arith.constant 0 : index
    %c0_143 = arith.constant 0 : index
    %304 = vector.load %arg14[%c1_141, %c0_142, %c0_143] : memref<2x1x64xf32, #tpu.memory_space<vmem>>, vector<1x1x64xf32>
    %305 = vector.shape_cast %304 : vector<1x1x64xf32> to vector<1x64xf32>
    %306 = vector.broadcast %305 : vector<1x64xf32> to vector<8x64xf32>
    %307 = arith.addf %303, %306 : vector<8x64xf32>
    %cst_144 = arith.constant 0.000000e+00 : f32
    %308 = vector.broadcast %cst_144 : f32 to vector<8x64xf32>
    %309 = arith.maximumf %307, %308 : vector<8x64xf32>
    %c1_145 = arith.constant 1 : index
    %c0_146 = arith.constant 0 : index
    %c0_147 = arith.constant 0 : index
    %310 = vector.load %arg15[%c1_145, %c0_146, %c0_147] : memref<2x64x32xf32, #tpu.memory_space<vmem>>, vector<1x64x32xf32>
    %311 = vector.shape_cast %310 : vector<1x64x32xf32> to vector<64x32xf32>
    %cst_148 = arith.constant dense<0.000000e+00> : vector<8x32xf32>
    %312 = tpu.matmul %309, %311, %cst_148 {dimension_numbers = #tpu.dot_dimension_numbers<[1], [0], [0], [1], [0, 0, 1, 1], [], []>} : vector<8x64xf32>, vector<64x32xf32>, vector<8x32xf32> -> vector<8x32xf32>
    %c1_149 = arith.constant 1 : index
    %c0_150 = arith.constant 0 : index
    %c0_151 = arith.constant 0 : index
    %313 = vector.load %arg16[%c1_149, %c0_150, %c0_151] : memref<2x1x32xf32, #tpu.memory_space<vmem>>, vector<1x1x32xf32>
    %314 = vector.shape_cast %313 : vector<1x1x32xf32> to vector<1x32xf32>
    %315 = vector.broadcast %314 : vector<1x32xf32> to vector<8x32xf32>
    %316 = arith.addf %312, %315 : vector<8x32xf32>
    %317 = arith.addf %300, %316 : vector<8x32xf32>
    %c1_152 = arith.constant 1 : index
    %c0_153 = arith.constant 0 : index
    %c0_154 = arith.constant 0 : index
    %318 = vector.load %arg17[%c1_152, %c0_153, %c0_154] : memref<2x1x32xf32, #tpu.memory_space<vmem>>, vector<1x1x32xf32>
    %319 = vector.shape_cast %318 : vector<1x1x32xf32> to vector<1x32xf32>
    %c1_155 = arith.constant 1 : index
    %c0_156 = arith.constant 0 : index
    %c0_157 = arith.constant 0 : index
    %320 = vector.load %arg18[%c1_155, %c0_156, %c0_157] : memref<2x1x32xf32, #tpu.memory_space<vmem>>, vector<1x1x32xf32>
    %321 = vector.shape_cast %320 : vector<1x1x32xf32> to vector<1x32xf32>
    %cst_158 = arith.constant dense<0.000000e+00> : vector<8xf32>
    %322 = vector.multi_reduction <add>, %317, %cst_158 [1] : vector<8x32xf32> to vector<8xf32>
    %323 = vector.shape_cast %322 : vector<8xf32> to vector<8x1xf32>
    %cst_159 = arith.constant 3.200000e+01 : f32
    %324 = vector.broadcast %cst_159 : f32 to vector<8x1xf32>
    %325 = arith.divf %323, %324 : vector<8x1xf32>
    %326 = vector.broadcast %325 : vector<8x1xf32> to vector<8x32xf32>
    %327 = arith.subf %317, %326 : vector<8x32xf32>
    %328 = arith.mulf %327, %327 : vector<8x32xf32>
    %cst_160 = arith.constant dense<0.000000e+00> : vector<8xf32>
    %329 = vector.multi_reduction <add>, %328, %cst_160 [1] : vector<8x32xf32> to vector<8xf32>
    %330 = vector.shape_cast %329 : vector<8xf32> to vector<8x1xf32>
    %cst_161 = arith.constant 3.200000e+01 : f32
    %331 = vector.broadcast %cst_161 : f32 to vector<8x1xf32>
    %332 = arith.divf %330, %331 : vector<8x1xf32>
    %333 = vector.broadcast %325 : vector<8x1xf32> to vector<8x32xf32>
    %334 = arith.subf %317, %333 : vector<8x32xf32>
    %cst_162 = arith.constant 9.99999974E-6 : f32
    %335 = vector.broadcast %cst_162 : f32 to vector<8x1xf32>
    %336 = arith.addf %332, %335 : vector<8x1xf32>
    %337 = math.rsqrt %336 : vector<8x1xf32>
    %338 = vector.broadcast %337 : vector<8x1xf32> to vector<8x32xf32>
    %339 = arith.mulf %334, %338 : vector<8x32xf32>
    %340 = vector.broadcast %319 : vector<1x32xf32> to vector<8x32xf32>
    %341 = arith.mulf %339, %340 : vector<8x32xf32>
    %342 = vector.broadcast %321 : vector<1x32xf32> to vector<8x32xf32>
    %343 = arith.addf %341, %342 : vector<8x32xf32>
    %c0_163 = arith.constant 0 : index
    %c0_164 = arith.constant 0 : index
    %344 = vector.load %arg19[%c0_163, %c0_164] : memref<8x32xf32, #tpu.memory_space<vmem>>, vector<8x32xf32>
    tpu.vector_store %arg19[%c0_163, %c0_164], %343 {strides = array<i32>} : memref<8x32xf32, #tpu.memory_space<vmem>>, vector<8x32xf32>,
    return
  }
  func.func @transform_0(%arg0: i32) -> (i32, i32) {
    %c0_i32 = arith.constant 0 : i32
    %c0_i32_0 = arith.constant 0 : i32
    return %arg0, %c0_i32 : i32, i32
  }
  func.func @transform_1(%arg0: i32) -> (i32, i32) {
    %c0_i32 = arith.constant 0 : i32
    %c0_i32_0 = arith.constant 0 : i32
    %c0_i32_1 = arith.constant 0 : i32
    return %c0_i32, %c0_i32_0 : i32, i32
  }
  func.func @transform_2(%arg0: i32) -> (i32, i32) {
    %c0_i32 = arith.constant 0 : i32
    %c0_i32_0 = arith.constant 0 : i32
    %c0_i32_1 = arith.constant 0 : i32
    return %c0_i32, %c0_i32_0 : i32, i32
  }
  func.func @transform_3(%arg0: i32) -> (i32, i32) {
    %c0_i32 = arith.constant 0 : i32
    %c0_i32_0 = arith.constant 0 : i32
    %c0_i32_1 = arith.constant 0 : i32
    return %c0_i32, %c0_i32_0 : i32, i32
  }
  func.func @transform_4(%arg0: i32) -> (i32, i32) {
    %c0_i32 = arith.constant 0 : i32
    %c0_i32_0 = arith.constant 0 : i32
    %c0_i32_1 = arith.constant 0 : i32
    return %c0_i32, %c0_i32_0 : i32, i32
  }
  func.func @transform_5(%arg0: i32) -> (i32, i32) {
    %c0_i32 = arith.constant 0 : i32
    %c0_i32_0 = arith.constant 0 : i32
    %c0_i32_1 = arith.constant 0 : i32
    return %c0_i32, %c0_i32_0 : i32, i32
  }
  func.func @transform_6(%arg0: i32) -> (i32, i32, i32) {
    %c0_i32 = arith.constant 0 : i32
    %c0_i32_0 = arith.constant 0 : i32
    %c0_i32_1 = arith.constant 0 : i32
    %c0_i32_2 = arith.constant 0 : i32
    return %c0_i32, %c0_i32_0, %c0_i32_1 : i32, i32, i32
  }
  func.func @transform_7(%arg0: i32) -> (i32, i32, i32) {
    %c0_i32 = arith.constant 0 : i32
    %c0_i32_0 = arith.constant 0 : i32
    %c0_i32_1 = arith.constant 0 : i32
    %c0_i32_2 = arith.constant 0 : i32
    return %c0_i32, %c0_i32_0, %c0_i32_1 : i32, i32, i32
  }
  func.func @transform_8(%arg0: i32) -> (i32, i32, i32) {
    %c0_i32 = arith.constant 0 : i32
    %c0_i32_0 = arith.constant 0 : i32
    %c0_i32_1 = arith.constant 0 : i32
    %c0_i32_2 = arith.constant 0 : i32
    return %c0_i32, %c0_i32_0, %c0_i32_1 : i32, i32, i32
  }
  func.func @transform_9(%arg0: i32) -> (i32, i32, i32) {
    %c0_i32 = arith.constant 0 : i32
    %c0_i32_0 = arith.constant 0 : i32
    %c0_i32_1 = arith.constant 0 : i32
    %c0_i32_2 = arith.constant 0 : i32
    return %c0_i32, %c0_i32_0, %c0_i32_1 : i32, i32, i32
  }
  func.func @transform_10(%arg0: i32) -> (i32, i32, i32) {
    %c0_i32 = arith.constant 0 : i32
    %c0_i32_0 = arith.constant 0 : i32
    %c0_i32_1 = arith.constant 0 : i32
    %c0_i32_2 = arith.constant 0 : i32
    return %c0_i32, %c0_i32_0, %c0_i32_1 : i32, i32, i32
  }
  func.func @transform_11(%arg0: i32) -> (i32, i32, i32) {
    %c0_i32 = arith.constant 0 : i32
    %c0_i32_0 = arith.constant 0 : i32
    %c0_i32_1 = arith.constant 0 : i32
    %c0_i32_2 = arith.constant 0 : i32
    return %c0_i32, %c0_i32_0, %c0_i32_1 : i32, i32, i32
  }
  func.func @transform_12(%arg0: i32) -> (i32, i32, i32) {
    %c0_i32 = arith.constant 0 : i32
    %c0_i32_0 = arith.constant 0 : i32
    %c0_i32_1 = arith.constant 0 : i32
    %c0_i32_2 = arith.constant 0 : i32
    return %c0_i32, %c0_i32_0, %c0_i32_1 : i32, i32, i32
  }
  func.func @transform_13(%arg0: i32) -> (i32, i32, i32) {
    %c0_i32 = arith.constant 0 : i32
    %c0_i32_0 = arith.constant 0 : i32
    %c0_i32_1 = arith.constant 0 : i32
    %c0_i32_2 = arith.constant 0 : i32
    return %c0_i32, %c0_i32_0, %c0_i32_1 : i32, i32, i32
  }
  func.func @transform_14(%arg0: i32) -> (i32, i32, i32) {
    %c0_i32 = arith.constant 0 : i32
    %c0_i32_0 = arith.constant 0 : i32
    %c0_i32_1 = arith.constant 0 : i32
    %c0_i32_2 = arith.constant 0 : i32
    return %c0_i32, %c0_i32_0, %c0_i32_1 : i32, i32, i32
  }
  func.func @transform_15(%arg0: i32) -> (i32, i32, i32) {
    %c0_i32 = arith.constant 0 : i32
    %c0_i32_0 = arith.constant 0 : i32
    %c0_i32_1 = arith.constant 0 : i32
    %c0_i32_2 = arith.constant 0 : i32
    return %c0_i32, %c0_i32_0, %c0_i32_1 : i32, i32, i32
  }
  func.func @transform_16(%arg0: i32) -> (i32, i32, i32) {
    %c0_i32 = arith.constant 0 : i32
    %c0_i32_0 = arith.constant 0 : i32
    %c0_i32_1 = arith.constant 0 : i32
    %c0_i32_2 = arith.constant 0 : i32
    return %c0_i32, %c0_i32_0, %c0_i32_1 : i32, i32, i32
  }
  func.func @transform_17(%arg0: i32) -> (i32, i32, i32) {
    %c0_i32 = arith.constant 0 : i32
    %c0_i32_0 = arith.constant 0 : i32
    %c0_i32_1 = arith.constant 0 : i32
    %c0_i32_2 = arith.constant 0 : i32
    return %c0_i32, %c0_i32_0, %c0_i32_1 : i32, i32, i32
  }
  func.func @transform_18(%arg0: i32) -> (i32, i32) {
    %c0_i32 = arith.constant 0 : i32
    %c0_i32_0 = arith.constant 0 : i32
    return %arg0, %c0_i32 : i32, i32
  }
}

</mosaic_0001>

<bundles_post_ra>
// kernel: tpu_custom_call.1
= control target key start
LH: loop header
LB: loop body
LE: loop exit
PB: predicated region body
PF: predicated region fallthrough
CT: control target
= control target key end

     0   :  { %s3145_s0 = inlined_call_operand.hbm [shape: f32[16,16], index: 0, kind: input, shape index: {}]   ;;  %s3146_s1 = inlined_call_operand.hbm [shape: f32[8,8], index: 1, kind: input, shape index: {}]   ;;  %s3147_s2 = inlined_call_operand.hbm [shape: f32[16,32], index: 2, kind: input, shape index: {}]   ;;  %s3148_s3 = inlined_call_operand.hbm [shape: f32[1,32], index: 3, kind: input, shape index: {}]   ;;  %s3149_s4 = inlined_call_operand.hbm [shape: f32[1,32], index: 4, kind: input, shape index: {}]   ;;  %s3150_s5 = inlined_call_operand.hbm [shape: f32[1,32], index: 5, kind: input, shape index: {}]   ;;  %s3151_s6 = inlined_call_operand.vmem [shape: f32[2,32,96], index: 6, kind: input, shape index: {}]   ;;  %s3152_s7 = inlined_call_operand.vmem [shape: f32[2,1,96], index: 7, kind: input, shape index: {}]   ;;  %s3153_s8 = inlined_call_operand.vmem [shape: f32[2,32,32], index: 8, kind: input, shape index: {}]   ;;  %s3154_s9 = inlined_call_operand.vmem [shape: f32[2,1,32], index: 9, kind: input, shape index: {}]   ;;  %s3155_s10 = inlined_call_operand.vmem [shape: f32[2,1,32], index: 10, kind: input, shape index: {}]   ;;  %s3156_s11 = inlined_call_operand.vmem [shape: f32[2,1,32], index: 11, kind: input, shape index: {}]   ;;  %s3157_s12 = inlined_call_operand.vmem [shape: f32[2,32,64], index: 12, kind: input, shape index: {}]   ;;  %s3158_s13 = inlined_call_operand.vmem [shape: f32[2,1,64], index: 13, kind: input, shape index: {}]   ;;  %s3159_s14 = inlined_call_operand.vmem [shape: f32[2,64,32], index: 14, kind: input, shape index: {}]   ;;  %s3160_s15 = inlined_call_operand.vmem [shape: f32[2,1,32], index: 15, kind: input, shape index: {}]   ;;  %s3161_s16 = inlined_call_operand.vmem [shape: f32[2,1,32], index: 16, kind: input, shape index: {}]   ;;  %s3162_s17 = inlined_call_operand.hbm [shape: f32[2,1,32], index: 17, kind: input, shape index: {}]   ;;  %s3163_s18 = inlined_call_operand.hbm [shape: f32[16,32], index: 18, kind: output, shape index: {}]  }
   0x1   :  { %3182 = sst [smem:[#allocation22_spill]] %s3145_s0 }
   0x2   :  { %3183 = sst [smem:[#allocation23_spill]] %s3146_s1 }
   0x3   :  { %3184 = sst [smem:[#allocation24_spill]] %s3147_s2 }
   0x4   :  { %3185 = sst [smem:[#allocation25_spill]] %s3148_s3 }
   0x5   :  { %3186 = sst [smem:[#allocation26_spill]] %s3149_s4 }
   0x6   :  { %3187 = sst [smem:[#allocation27_spill]] %s3150_s5 }
   0x7   :  { %3188 = sst [smem:[#allocation28_spill]] %s3156_s11 }
   0x8   :  { %3189 = sst [smem:[#allocation29_spill]] %s3158_s13 }
   0x9   :  { %3190 = sst [smem:[#allocation30_spill]] %s3160_s15 }
   0xa   :  { %3191 = sst [smem:[#allocation31_spill]] %s3161_s16 }
   0xb   :  { %3192 = sst [smem:[#allocation32_spill]] %s3162_s17 }
   0xc   :  { %3193 = sst [smem:[#allocation33_spill]] %s3163_s18 }
   0xd   :  { %23 = vsyncpa [#allocation3], 0 }
   0xe   :  { %25 = vsyncpa [#allocation3 + $0x1], 0 }
   0xf   :  { %26 = vsyncpa [#allocation6], 0 }
  0x10   :  { %27 = vsyncpa [#allocation9], 0 }
  0x11   :  { %28 = vsyncpa [#allocation12], 0 }
  0x12   :  { %29 = vsyncpa [#allocation4], 0 }
  0x13   :  { %31 = vsyncpa [#allocation4 + $0x1], 0  ;;  %s2640_s27 = smov 0   ;;  %s2642_s28 = smov 0  }
  0x14   :  { %s2644_s29 = smov 0   ;;  %s2646_s30 = smov 0  }
  0x15 LB: > { %3194 = sst [smem:[#allocation20_spill]] %s2514_s29  ;;  %s2664_s21 = sadd.s32 4294967295, %s2518_s30   ;;  %s2518_s30 = sphi %s2646_s30, %s3231_s30   ;;  %s2514_s29 = sphi %s2644_s29, %s3228_s29   ;;  %s2510_s28 = sphi %s2642_s28, %s3230_s28   ;;  %s2506_s27 = sphi %s2640_s27, %s3229_s27  }
  0x16   : > { %s3195_s1 = sld [smem:[#allocation23_spill]]  ;;  %p1958_p0 = scmp.ge.s32.totalorder %s2518_s30, 1 }
  0x17   : > { %p58_p1 = scmp.eq.s32.totalorder %s2664_s21, 0  ;;  %p451_p2 = scmp.lt.s32.totalorder %s2518_s30, 3 }
  0x18   : > { %s2520_s2 = smov [#allocation5]   ;;  %s3197_s3 = sld [smem:[#allocation25_spill]] }
  0x19   : > { %p2669_p3 = pnand %p1958_p0, %p451_p2  ;;  %s465_s23 = sshll.u32 %s2520_s2, 4  ;;  %s466_s23 = int_to_ptr.vmem [resolvable:$true] %s465_s23 }
  0x1a   : > { %s2521_s19 = smov [#allocation8]   ;;  %s3199_s5 = sld [smem:[#allocation27_spill]] }
  0x1b   : > { %p2069_p5 = pneg %p2669_p3  ;;  %s2522_s13 = smov [#allocation11]  }
  0x1c   : > { %s463_s20 = sshll.u32 %s3195_s1, 4  ;;  %s491_s1 = sshll.u32 %s2521_s19, 4  ;;  %s464_s20 = int_to_ptr.hbm [resolvable:$true] %s463_s20  ;;  %s492_s1 = int_to_ptr.vmem [resolvable:$true] %s491_s1 }
  0x1d   : > { %p2681_p6 = pnand %p2069_p5, %p58_p1  ;;  %s515_s11 = sshll.u32 %s2522_s13, 4  ;;  %s516_s11 = int_to_ptr.vmem [resolvable:$true] %s515_s11 }
  0x1e   : > { %s489_s26 = sshll.u32 %s3197_s3, 4  ;;  %s3200_s3 = sld [smem:[#allocation24_spill]]  ;;  %s490_s26 = int_to_ptr.hbm [resolvable:$true] %s489_s26 }
  0x1f   : > { %2072 = dma.hbm_to_vmem [thread:$0]  (!%p2681_p6), %s464_s20, 128, %s466_s23, [#allocation6]  }
  0x20   : > { %s513_s16 = sshll.u32 %s3199_s5, 4  ;;  %s2523_s19 = smov [#allocation7]   ;;  %s514_s16 = int_to_ptr.hbm [resolvable:$true] %s513_s16 }
  0x21   : > { %2078 = dma.hbm_to_vmem [thread:$0]  (!%p2681_p6), %s490_s26, 16, %s492_s1, [#allocation9]  }
  0x22   : > { %2084 = dma.hbm_to_vmem [thread:$0]  (!%p2681_p6), %s514_s16, 16, %s516_s11, [#allocation12]  }
  0x23   : > { %s476_s18 = sshll.u32 %s2523_s19, 4  ;;  %s2524_s2 = smov 128   ;;  %s477_s18 = int_to_ptr.vmem [resolvable:$true] %s476_s18 }
  0x24   : > { %s474_s15 = sshll.u32 %s3200_s3, 4  ;;  %s2525_s5 = smov 8   ;;  %s475_s15 = int_to_ptr.hbm [resolvable:$true] %s474_s15 }
  0x25   : > { %2075 = dma.hbm_to_vmem [thread:$0]  (!%p2681_p6), %s475_s15, 256, %s477_s18, [#allocation6], %s2524_s2, %s2524_s2, %s2525_s5  }
  0x26   : > { %s3201_s4 = sld [smem:[#allocation26_spill]]  ;;  %s2526_s13 = smov [#allocation10]  }
  0x27   : > { %s503_s26 = sshll.u32 %s2526_s13, 4  ;;  %s3202_s17 = sld [smem:[#allocation32_spill]]  ;;  %s504_s26 = int_to_ptr.vmem [resolvable:$true] %s503_s26 }
  0x28   : > { %s2527_s5 = smov [#allocation13]   ;;  %s2528_s24 = smov 16  }
  0x29   : > { %s559_s15 = sshll.u32 %s2527_s5, 4  ;;  %s2529_s25 = smov 1   ;;  %s560_s15 = int_to_ptr.vmem [resolvable:$true] %s559_s15 }
  0x2a   : > { %s1957_s19 = sadd.s32 4294967294, %s2518_s30   ;;  %s2711_s18 = sadd.s32 1, %s2518_s30  }
  0x2b   : > { %s41_s2 = ssub.s32 %s2518_s30, %s2711_s18  ;;  %s44_s20 = sadd.s32 1, %s2514_s29 }
  0x2c   : > { %s501_s3 = sshll.u32 %s3201_s4, 4  ;;  %p42_p7 = scmp.eq.s32.totalorder %s41_s2, 0  ;;  %s502_s3 = int_to_ptr.hbm [resolvable:$true] %s501_s3 }
  0x2d   : > { %s557_s1 = sshll.u32 %s3202_s17, 4  ;;  %p51_p8 = scmp.ne.s32.totalorder %s2514_s29, %s2510_s28  ;;  %s558_s1 = int_to_ptr.hbm [resolvable:$true] %s557_s1 }
  0x2e   : > { %2081 = dma.hbm_to_vmem [thread:$0]  (!%p2681_p6), %s502_s3, 16, %s504_s26, [#allocation9]  }
  0x2f   : > { %2087 = dma.hbm_to_vmem [thread:$0]  (!%p2681_p6), %s558_s1, 32, %s560_s15, [#allocation12], %s2528_s24, %s2528_s24, %s2529_s25  }
  0x30   : > { %p52_p9 = scmp.eq.s32.totalorder %s2518_s30, 0  ;;  %p57_p10 = scmp.ne.s32.totalorder %s2510_s28, %s2506_s27 }
  0x31   : > { %s2722_s23 = scalar_select %p42_p7, %s2514_s29, %s44_s20  }
  0x32   : > { %p2724_p11 = por %p52_p9, %p51_p8  ;;  %p2730_p12 = por %p58_p1, %p57_p10 }
  0x33   : > { %3203 = sst [smem:[#allocation21_spill]] %s2722_s23  ;;  %p438_p13 = scmp.eq.s32.totalorder %s2664_s21, 1 }
  0x34   : > { %p444_p0 = scmp.eq.s32.totalorder %s1957_s19, 1  ;;  %p2102_p2 = scmp.lt.s32.totalorder %s2518_s30, 2 }
  0x35   : > { %s573_s13 = sand.u32 1, %s2514_s29   ;;  %p2737_p5 = por %p438_p13, %p51_p8 }
  0x36   : > { %p2741_p6 = por %p444_p0, %p57_p10  ;;  %s1966_s16 = sshll.u32 %s573_s13, 3 }
  0x37   : > { %s1967_s1 = sshll.u32 %s2518_s30, 3  ;;  %s3208_s24 = sld [smem:[#allocation22_spill]] }
  0x38   : > { %s577_s2 = scalar_lea.vmem [#allocation2], %s1966_s16  ;;  %p2751_p7 = pnand %p2102_p2, %p2724_p11 }
  0x39   : > { %s585_s20 = sshll.u32 %s577_s2, 4  ;;  %s574_s17 = scalar_lea.sflag [#allocation3], %s573_s13  ;;  %s586_s20 = int_to_ptr.vmem [resolvable:$true] %s585_s20 }
  0x3a   : > { %p2414_p9 = pneg %p2751_p7 }
  0x3d   : > { %s581_s25 = scalar_lea.hbm %s3208_s24, %s1967_s1  ;;  %s2417_s5 = scalar_lea.hbm %s3208_s24, 16 }
  0x3e   : > { %s583_s4 = sshll.u32 %s581_s25, 4  ;;  %s584_s4 = int_to_ptr.hbm [resolvable:$true] %s583_s4 }
  0x3f   : > { %s2410_s23 = sshra.s32 %s584_s4, 4  ;;  %s2411_s23 = int_to_ptr.hbm [resolvable:$true] %s2410_s23 }
  0x40   : > { %s2412_s29 = scalar_lea.hbm %s2411_s23, 8  ;;  %p2418_p11 = scmp.lt.s32.totalorder %s2411_s23, %s3208_s24 }
  0x41   : > { %p2413_p8 = scmp.ne.s32.totalorder %s2411_s23, %s2412_s29  ;;  %p2419_p0 = scmp.lt.s32.totalorder %s2417_s5, %s2412_s29 }
  0x43   : > { %p2415_p10 = pnand %p2414_p9, %p2413_p8  ;;  %p2420_p2 = por %p2419_p0, %p2418_p11 }
  0x45   : > { %p2416_p13 = pneg %p2415_p10 }
  0x47   : > { %p2421_p4 = pnand %p2420_p2, %p2416_p13 }
  0x49   : > { %2424 = shalt.err (!%p2421_p4)
}
  0x4a   : > { %2091 = dma.hbm_to_vmem [thread:$0]  (!%p2751_p7), %s584_s4, 128, %s586_s20, %s574_s17  }
  0x4b   : > { %594 = sbr.rel (%p2669_p3) target bundleno = 4975 (0x136f), region = 92  ;;  %s2768_s13 = sand.u32 (!%p2669_p3), 1, %s2510_s28  }
  0x4c   : > { %s3171_s25 = sshll.u32 (!%p2669_p3), %s2768_s13, 3  ;;  %s597_s2 = scalar_lea.sflag (!%p2669_p3), [#allocation3], %s2768_s13 }
  0x4d   : > { %s600_s29 = scalar_lea.vmem (!%p2669_p3), [#allocation2], %s3171_s25 }
  0x50   : > { %2485 = dma.done.wait (%p2730_p12), %s597_s2, 128  }
  0x51   : > { %2487 = vsyncadd (%p2730_p12), %s597_s2, 4294967168 }
  0x52   : > { %2489 = dma.done.wait (%p58_p1), [#allocation6], 384  }
  0x53   : > { %2491 = vsyncadd (%p58_p1), [#allocation6], 4294966912 }
  0x54   : > { %2493 = dma.done.wait (%p58_p1), [#allocation9], 32  }
  0x55   : > { %2495 = vsyncadd (%p58_p1), [#allocation9], 4294967264 }
  0x56   : > { %2497 = dma.done.wait (%p58_p1), [#allocation12], 48  }
  0x57   : > { %2499 = vsyncadd (%p58_p1), [#allocation12], 4294967248  ;;  %v686_v0 = vld [vmem:[#allocation7 + $0x8] sm:$0xff]  ;;  %v685_v1 = vld [vmem:[#allocation7] sm:$0xff]  ;;  %vm691_vm0 = vcmask 130048   ;;  %vm717_vm1 = vcmask 261120  }
  0x58   : > { %709 = vmatpush.msra.mxu2 %v686_v0  ;;  %v684_v2 = vld [vmem:[%s600_s29] sm:$0xff]  ;;  %v2530_v7 = vmov 32.0   ;;  %v758_v19 = vld [vmem:[%s3151_s6 + $0x18] sm:$0xff]  ;;  %v757_v20 = vld [vmem:[%s3151_s6 + $0x10] sm:$0xff]  ;;  %s3180_s15 = smov 88   ;;  %s2532_s3 = smov 64  }
  0x59   : > { %v2167_v3 = vld [vmem:[#allocation8] ss:$0 sm:$0xff]  ;;  %2186 = vrcp.f32 %v2530_v7  ;;  %778 = vmatpush.msra.mxu1 %v758_v19  ;;  %v755_v22 = vld [vmem:[%s3151_s6] sm:$0xff]  ;;  %v2168_v32 = vld [vmem:[#allocation10] ss:$0 sm:$0xff]  ;;  %s2533_s2 = smov 96  }
  0x5a   : > { %710 = vmatpush.msra.mxu2 %v685_v1  ;;  %v756_v21 = vld [vmem:[%s3151_s6 + $0x8] sm:$0xff]  ;;  %v2170_v38 = vld [vmem:[%s3152_s7] ss:$0 sm:$0xff]  ;;  %s2534_s29 = smov 80   ;;  %s2535_s4 = smov 120   ;;  %vm790_vm6 = vcmask 64512  }
  0x5b   : > { %1977 = vmatmul.msk.f32.vlgmr.msra.gmra.mxu2 %vm691_vm0, %v684_v2  ;;  %779 = vmatpush.msra.mxu1 %v757_v20  ;;  %v2169_v35 = vld [vmem:[#allocation11] ss:$0 sm:$0xff]  ;;  %s3181_s17 = smov 112   ;;  %s3178_s22 = smov 72   ;;  %v2838_v46 = vld [vmem:[#allocation5] sm:$0xff] }
  0x5c   : > { %s3173_s23 = smov 48   ;;  %s3176_s0 = smov 104  }
  0x5d   : > { %780 = vmatpush.msra.mxu1 %v756_v21  ;;  %s3174_s20 = smov 40   ;;  %s3175_s19 = smov 56  }
  0x5e   : > { %s3172_s16 = smov 16   ;;  %s3177_s1 = smov 8  }
  0x5f   : > { %v2187_v8 = vpop.eup %2186  ;;  %781 = vmatpush.msra.mxu1 %v755_v22  ;;  %s3179_s5 = smov 24   ;;  %s3213_s25 = sld [smem:[#allocation31_spill]] }
  0x60   : > { %v722_v9 = vmul.f32 32.0, %v2187_v8  ;;  %vm726_vm2 = vweird.f32 %v2187_v8 }
  0x62   : > { %v723_v10 = vsub.f32 1.0, %v722_v9 }
  0x64   : > { %v724_v11 = vmul.f32 %v2187_v8, %v723_v10 }
  0x66   : > { %v725_v12 = vadd.f32 %v2187_v8, %v724_v11 }
  0x68   : > { %v2792_v13 = vsel %vm726_vm2, %v2187_v8, %v725_v12 }
  0xde   : > { %v712_v4 = vpop.f32.mrf.mxu2 }
  0xdf   : > { %v713_v5 = vadd.f32 %v2167_v3, %v712_v4 }
  0xe1   : > { %v718_v6 = vsel %vm717_vm1, %v713_v5, 0.0 }
  0xe2   : > { %719 = vadd.xlane.f32.xlu0 %v718_v6 }
 0x155   : > { %v720_v14 = vpop.xlane.xlu0 %719 }
 0x156   : > { %v728_v15 = vmul.f32 %v2792_v13, %v720_v14 }
 0x158   : > { %v729_v16 = vsub.f32 %v713_v5, %v728_v15 }
 0x15a   : > { %v730_v17 = vmul.f32 %v729_v16, %v729_v16 }
 0x15c   : > { %v731_v18 = vsel %vm717_vm1, %v730_v17, 0.0 }
 0x15d   : > { %732 = vadd.xlane.f32.xlu0 %v731_v18 }
 0x1d0   : > { %v733_v23 = vpop.xlane.xlu0 %732 }
 0x1d1   : > { %v734_v24 = vmul.f32 %v733_v23, %v2792_v13 }
 0x1d3   : > { %v735_v25 = vadd.f32 1e-05, %v734_v24 }
 0x1d5   : > { %2188 = vrsqrt.f32 %v735_v25  ;;  %vm742_vm4 = vweird.f32 %v735_v25 }
 0x1db   : > { %v2189_v26 = vpop.eup %2188 }
 0x1dc   : > { %v737_v27 = vmul.f32 %v2189_v26, %v735_v25  ;;  %vm743_vm3 = vweird.f32 %v2189_v26 }
 0x1dd   : > { %vm744_vm5 = vmor %vm742_vm4, %vm743_vm3 }
 0x1de   : > { %v738_v28 = vmul.f32 %v2189_v26, %v737_v27 }
 0x1e0   : > { %v739_v29 = vmul.f32 0.5, %v738_v28 }
 0x1e2   : > { %v740_v30 = vsub.f32 1.5, %v739_v29 }
 0x1e4   : > { %v741_v31 = vmul.f32 %v2189_v26, %v740_v30 }
 0x1e6   : > { %v745_v33 = vsel %vm744_vm5, %v2189_v26, %v741_v31 }
 0x1e7   : > { %v746_v34 = vmul.f32 %v745_v33, %v729_v16 }
 0x1e9   : > { %v750_v36 = vmul.f32 %v2168_v32, %v746_v34 }
 0x1eb   : > { %v2809_v37 = vadd.f32 %v2169_v35, %v750_v36 }
 0x1ed   : > { %1978 = vmatmul.msk.f32.vlgmr.msra.gmra.mxu1 %vm717_vm1, %v2809_v37 }
 0x26a   : > { %v783_v39 = vpop.f32.mrf.mxu1 }
 0x26b   : > { %v2816_v40 = vadd.f32 %v2170_v38, %v783_v39 }
 0x26d   : > { %867 = vrot.lane.b32.xlu0 %v2816_v40, %s3180_s15  ;;  %839 = vrot.lane.b32.xlu2 %v2816_v40, %s2532_s3  ;;  %s3221_s15 = smov 8  }
 0x26e   : > { %788 = vrot.lane.b32.xlu1 %v2816_v40, %s2533_s2 }
 0x275   : > { %945 = vrot.lane.b32.xlu0 %v2816_v40, %s2534_s29  ;;  %865 = vrot.lane.b32.xlu2 %v2816_v40, %s2535_s4 }
 0x27d   : > { %943 = vrot.lane.b32.xlu0 %v2816_v40, %s3181_s17  ;;  %1023 = vrot.lane.b32.xlu2 %v2816_v40, %s3178_s22  ;;  %s3214_s22 = smov 112   ;;  %s3223_s17 = smov 16  }
 0x2c7   : > { %v840_v41 = vpop.permute.xlu2 %839 }
 0x2c8   : > { %860 = vmatpush.msra.mxu3 %v840_v41 }
 0x2cf   : > { %v866_v60 = vpop.permute.xlu2 %865 }
 0x2d7   : > { %v1024_v61 = vpop.permute.xlu2 %1023 }
 0x2df   : > { %v868_v42 = vpop.permute.xlu0 %867 }
 0x2e0   : > { %v789_v43 = vpop.permute.xlu1 %788  ;;  %1982 = vmatpush.xpose.msk.msrb.mxu3 %vm790_vm6, %v868_v42 }
 0x2e1   : > { %1979 = vmatpush.xpose.msk.msrb.mxu2 %vm790_vm6, %v789_v43 }
 0x2e4   : > { %1980 = vmatmul.msk.f32.vlgmr.msrb.gmra.mxu2 %vm790_vm6, %v2816_v40 }
 0x2e7   : > { %v946_v44 = vpop.permute.xlu0 %945 }
 0x2e8   : > { %1985 = vmatpush.xpose.msk.msra.mxu2 %vm790_vm6, %v946_v44 }
 0x2ef   : > { %v944_v45 = vpop.permute.xlu0 %943 }
 0x2f0   : > { %1986 = vmatmul.msk.f32.vlgmr.msra.gmra.mxu2 %vm790_vm6, %v944_v45 }
 0x367   : > { %v812_v47 = vpop.f32.mrf.mxu2 }
 0x368   : > { %v813_v48 = vadd.f32 %v812_v47, %v2838_v46 }
 0x36a   : > { %v815_v49 = vsel %vm790_vm6, %v813_v48, -inf }
 0x36b   : > { %816 = vmax.xlane.f32.xlu1 %v815_v49 }
 0x373   : > { %v968_v50 = vpop.f32.mrf.mxu2 }
 0x374   : > { %v969_v51 = vadd.f32 %v968_v50, %v2838_v46 }
 0x376   : > { %v971_v52 = vsel %vm790_vm6, %v969_v51, -inf }
 0x377   : > { %972 = vmax.xlane.f32.xlu0 %v971_v52 }
 0x38b   : > { %995 = vrot.lane.b32.xlu0 %v2816_v40, %s3173_s23 }
 0x3de   : > { %v817_v53 = vpop.xlane.xlu1 %816 }
 0x3df   : > { %v818_v54 = vsub.f32 %v813_v48, %v817_v53 }
 0x3e1   : > { %v819_v55 = vmul.f32 1.442695, %v818_v54 }
 0x3e3   : > { %2190 = vpow2.f32 %v819_v55 }
 0x3e9   : > { %v2191_v56 = vpop.eup %2190 }
 0x3ea   : > { %v821_v57 = vsel %vm790_vm6, %v2191_v56, 0.0  ;;  %v973_v58 = vpop.xlane.xlu0 %972 }
 0x3eb   : > { %822 = vadd.xlane.f32.xlu2 %v821_v57  ;;  %v974_v12 = vsub.f32 %v969_v51, %v973_v58 }
 0x3ed   : > { %v975_v14 = vmul.f32 1.442695, %v974_v12 }
 0x3fd   : > { %v996_v59 = vpop.permute.xlu0 %995 }
 0x3fe   : > { %1016 = vmatpush.msrb.mxu1 %v996_v59 }
 0x403   : > { %1021 = vrot.lane.b32.xlu2 %v2816_v40, %s3176_s0  ;;  %s3211_s0 = sld [smem:[#allocation29_spill]] }
 0x45e   : > { %v823_v62 = vpop.xlane.xlu2 %822 }
 0x45f   : > { %2192 = vrcp.f32 %v823_v62  ;;  %v835_v2 = vand.u32 2147483648, %v823_v62  ;;  %v833_v4 = vand.u32 2147483647, %v823_v62  ;;  %vm829_vm8 = vweird.f32 %v823_v62 }
 0x460   : > { %2194 = vpow2.f32 %v975_v14  ;;  %v1118_v14 = vld [vmem:[%s3153_s8 + $0x18] sm:$0xff] }
 0x461   : > { %v836_v6 = vor.u32 1.1754944e-38, %v835_v2  ;;  %vm834_vm10 = vcmp.eq.f32.partialorder %v833_v4, 8.507059e+37  ;;  %1138 = vmatpush.msrb.mxu2 %v1118_v14  ;;  %v1996_v14 = vld [vmem:[%s3151_s6 + $0x30] sm:$0xff] }
 0x465   : > { %v2193_v63 = vpop.eup %2192 }
 0x466   : > { %v825_v0 = vmul.f32 %v2193_v63, %v823_v62  ;;  %vm830_vm7 = vweird.f32 %v2193_v63  ;;  %v1022_v10 = vpop.permute.xlu2 %1021  ;;  %v2195_v18 = vpop.eup %2194 }
 0x467   : > { %vm831_vm9 = vmor %vm829_vm8, %vm830_vm7  ;;  %v977_v21 = vsel %vm790_vm6, %v2195_v18, 0.0 }
 0x468   : > { %v826_v1 = vsub.f32 1.0, %v825_v0 }
 0x46a   : > { %v827_v3 = vmul.f32 %v2193_v63, %v826_v1 }
 0x46c   : > { %v828_v5 = vadd.f32 %v2193_v63, %v827_v3 }
 0x46e   : > { %v832_v7 = vsel %vm831_vm9, %v2193_v63, %v828_v5 }
 0x46f   : > { %v837_v8 = vsel %vm834_vm10, %v836_v6, %v832_v7  ;;  %vm1113_vm10 = vcmask 195584  }
 0x470   : > { %v838_v9 = vmul.f32 %v2191_v56, %v837_v8 }
 0x472   : > { %1981 = vmatmul.msk.f32.vlgmr.msra.gmra.mxu3 %vm790_vm6, %v838_v9 }
 0x473   : > { %1988 = vmatpush.xpose.msk.msra.mxu3 %vm790_vm6, %v1024_v61 }
 0x47a   : > { %1983 = vmatmul.msk.f32.vlgmr.msrb.gmra.mxu3 %vm790_vm6, %v866_v60 }
 0x482   : > { %1989 = vmatmul.msk.f32.vlgmr.msra.gmra.mxu3 %vm790_vm6, %v1022_v10 }
 0x4f5   : > { %v2853_v11 = vpop.f32.mrf.mxu3 }
 0x4fd   : > { %v890_v15 = vpop.f32.mrf.mxu3 }
 0x4fe   : > { %v891_v16 = vadd.f32 %v890_v15, %v2838_v46  ;;  %v1117_v15 = vld [vmem:[%s3153_s8 + $0x10] sm:$0xff] }
 0x4ff   : > { %1139 = vmatpush.msrb.mxu2 %v1117_v15  ;;  %v1995_v15 = vld [vmem:[%s3151_s6 + $0x28] sm:$0xff] }
 0x500   : > { %v893_v17 = vsel %vm790_vm6, %v891_v16, -inf }
 0x501   : > { %894 = vmax.xlane.f32.xlu1 %v893_v17  ;;  %v1115_v17 = vld [vmem:[%s3153_s8] sm:$0xff] }
 0x505   : > { %v1046_v19 = vpop.f32.mrf.mxu3 }
 0x506   : > { %v1047_v20 = vadd.f32 %v1046_v19, %v2838_v46 }
 0x508   : > { %v1049_v22 = vsel %vm790_vm6, %v1047_v20, -inf }
 0x509   : > { %978 = vadd.xlane.f32.xlu1 %v977_v21  ;;  %1050 = vmax.xlane.f32.xlu2 %v1049_v22 }
 0x521   : > { %1073 = vrot.lane.b32.xlu2 %v2816_v40, %s3174_s20  ;;  %s3210_s20 = sld [smem:[#allocation28_spill]] }
 0x574   : > { %v895_v23 = vpop.xlane.xlu1 %894 }
 0x575   : > { %v896_v24 = vsub.f32 %v891_v16, %v895_v23  ;;  %v1116_v16 = vld [vmem:[%s3153_s8 + $0x8] sm:$0xff] }
 0x576   : > { %1140 = vmatpush.msrb.mxu2 %v1116_v16  ;;  %v1994_v16 = vld [vmem:[%s3151_s6 + $0x20] sm:$0xff] }
 0x577   : > { %v897_v25 = vmul.f32 1.442695, %v896_v24  ;;  %v2171_v24 = vld [vmem:[%s3154_s9] ss:$0 sm:$0xff] }
 0x578   : > { %1141 = vmatpush.msrb.mxu2 %v1115_v17 }
 0x579   : > { %2196 = vpow2.f32 %v897_v25 }
 0x57c   : > { %v979_v26 = vpop.xlane.xlu1 %978  ;;  %v1051_v27 = vpop.xlane.xlu2 %1050 }
 0x57d   : > { %2198 = vrcp.f32 %v979_v26  ;;  %v1052_v28 = vsub.f32 %v1047_v20, %v1051_v27  ;;  %v991_v35 = vand.u32 2147483648, %v979_v26  ;;  %v989_v39 = vand.u32 2147483647, %v979_v26 }
 0x57e   : > { %vm985_vm12 = vweird.f32 %v979_v26 }
 0x57f   : > { %v2197_v29 = vpop.eup %2196  ;;  %v1053_v30 = vmul.f32 1.442695, %v1052_v28  ;;  %v992_v43 = vor.u32 1.1754944e-38, %v991_v35  ;;  %vm990_vm14 = vcmp.eq.f32.partialorder %v989_v39, 8.507059e+37  ;;  %v1179_v35 = vld [vmem:[%s3157_s12] sm:$0xff]  ;;  %v1216_v39 = vld [vmem:[%s3159_s14 + $0x28] sm:$0xff] }
 0x580   : > { %v899_v31 = vsel %vm790_vm6, %v2197_v29, 0.0 }
 0x581   : > { %900 = vadd.xlane.f32.xlu1 %v899_v31  ;;  %2200 = vpow2.f32 %v1053_v30 }
 0x583   : > { %v2199_v32 = vpop.eup %2198 }
 0x584   : > { %v981_v33 = vmul.f32 %v2199_v32, %v979_v26  ;;  %vm986_vm11 = vweird.f32 %v2199_v32  ;;  %v1074_v5 = vpop.permute.xlu2 %1073 }
 0x585   : > { %vm987_vm13 = vmor %vm985_vm12, %vm986_vm11 }
 0x586   : > { %v982_v34 = vsub.f32 1.0, %v981_v33  ;;  %v1182_v33 = vld [vmem:[%s3157_s12 + $0x18] sm:$0xff] }
 0x587   : > { %v2201_v36 = vpop.eup %2200  ;;  %1202 = vmatpush.msra.mxu1 %v1182_v33 }
 0x588   : > { %v983_v38 = vmul.f32 %v2199_v32, %v982_v34  ;;  %v1055_v41 = vsel %vm790_vm6, %v2201_v36, 0.0  ;;  %v1180_v34 = vld [vmem:[%s3157_s12 + $0x8] sm:$0xff] }
 0x589   : > { %1056 = vadd.xlane.f32.xlu1 %v1055_v41 }
 0x58a   : > { %v984_v42 = vadd.f32 %v2199_v32, %v983_v38  ;;  %v1217_v38 = vld [vmem:[%s3159_s14 + $0x30] sm:$0xff] }
 0x58c   : > { %v988_v44 = vsel %vm987_vm13, %v2199_v32, %v984_v42 }
 0x58d   : > { %v993_v45 = vsel %vm990_vm14, %v992_v43, %v988_v44  ;;  %v1215_v43 = vld [vmem:[%s3159_s14 + $0x20] sm:$0xff]  ;;  %vm1223_vm14 = vcmask 523264  }
 0x58e   : > { %v994_v47 = vmul.f32 %v2195_v18, %v993_v45  ;;  %v1214_v45 = vld [vmem:[%s3159_s14 + $0x18] sm:$0xff] }
 0x590   : > { %1987 = vmatmul.msk.f32.vlgmr.msrb.gmra.mxu1 %vm790_vm6, %v994_v47 }
 0x5a2   : > { %917 = vrot.lane.b32.xlu1 %v2816_v40, %s3175_s19  ;;  %s3219_s19 = smov 40  }
 0x5f4   : > { %v901_v48 = vpop.xlane.xlu1 %900 }
 0x5f5   : > { %2202 = vrcp.f32 %v901_v48  ;;  %v913_v58 = vand.u32 2147483648, %v901_v48  ;;  %vm907_vm2 = vweird.f32 %v901_v48  ;;  %v911_v60 = vand.u32 2147483647, %v901_v48 }
 0x5f7   : > { %v914_v62 = vor.u32 1.1754944e-38, %v913_v58  ;;  %vm912_vm4 = vcmp.eq.f32.partialorder %v911_v60, 8.507059e+37  ;;  %v1212_v60 = vld [vmem:[%s3159_s14 + $0x8] sm:$0xff] }
 0x5fb   : > { %v2203_v49 = vpop.eup %2202 }
 0x5fc   : > { %v1057_v50 = vpop.xlane.xlu1 %1056  ;;  %v903_v51 = vmul.f32 %v2203_v49, %v901_v48  ;;  %vm908_vm15 = vweird.f32 %v2203_v49 }
 0x5fd   : > { %2204 = vrcp.f32 %v1057_v50  ;;  %vm909_vm3 = vmor %vm907_vm2, %vm908_vm15  ;;  %v1069_v1 = vand.u32 2147483648, %v1057_v50  ;;  %vm1063_vm7 = vweird.f32 %v1057_v50  ;;  %v1067_v2 = vand.u32 2147483647, %v1057_v50 }
 0x5fe   : > { %v904_v52 = vsub.f32 1.0, %v903_v51 }
 0x5ff   : > { %v1070_v7 = vor.u32 1.1754944e-38, %v1069_v1  ;;  %vm1068_vm9 = vcmp.eq.f32.partialorder %v1067_v2, 8.507059e+37 }
 0x600   : > { %v905_v54 = vmul.f32 %v2203_v49, %v904_v52 }
 0x602   : > { %v906_v57 = vadd.f32 %v2203_v49, %v905_v54 }
 0x603   : > { %v2205_v53 = vpop.eup %2204 }
 0x604   : > { %v1059_v55 = vmul.f32 %v2205_v53, %v1057_v50  ;;  %v910_v61 = vsel %vm909_vm3, %v2203_v49, %v906_v57  ;;  %vm1064_vm5 = vweird.f32 %v2205_v53 }
 0x605   : > { %v915_v63 = vsel %vm912_vm4, %v914_v62, %v910_v61  ;;  %vm1065_vm8 = vmor %vm1063_vm7, %vm1064_vm5  ;;  %v2174_v61 = vld [vmem:[%s3211_s0] ss:$0 sm:$0xff] }
 0x606   : > { %v1060_v56 = vsub.f32 1.0, %v1059_v55  ;;  %v916_v4 = vmul.f32 %v2197_v29, %v915_v63 }
 0x608   : > { %v1061_v40 = vmul.f32 %v2205_v53, %v1060_v56  ;;  %v2173_v56 = vld [vmem:[%s3210_s20] ss:$0 sm:$0xff] }
 0x60a   : > { %v1062_v0 = vadd.f32 %v2205_v53, %v1061_v40  ;;  %v1211_v40 = vld [vmem:[%s3159_s14] sm:$0xff] }
 0x60c   : > { %v1066_v6 = vsel %vm1065_vm8, %v2205_v53, %v1062_v0  ;;  %v2172_v53 = vld [vmem:[%s3155_s10] ss:$0 sm:$0xff] }
 0x60d   : > { %v1018_v59 = vpop.f32.mrf.mxu1  ;;  %v1071_v8 = vsel %vm1068_vm9, %v1070_v7, %v1066_v6 }
 0x60e   : > { %1104 = vrot.lane.b32.xlu0 %v1018_v59, %s3172_s16  ;;  %v1072_v9 = vmul.f32 %v2201_v36, %v1071_v8  ;;  %v1218_v36 = vld [vmem:[%s3159_s14 + $0x38] sm:$0xff]  ;;  %v1213_v59 = vld [vmem:[%s3159_s14 + $0x10] sm:$0xff]  ;;  %s3220_s16 = smov 48  }
 0x60f   : > { %1235 = vmatpush.msrb.mxu3 %v1218_v36 }
 0x611   : > { %1236 = vmatpush.msrb.mxu3 %v1217_v38 }
 0x613   : > { %1237 = vmatpush.msrb.mxu3 %v1216_v39 }
 0x614   : > { %v918_v3 = vpop.permute.xlu1 %917 }
 0x615   : > { %938 = vmatpush.msra.mxu0 %v918_v3  ;;  %1238 = vmatpush.msrb.mxu3 %v1215_v43 }
 0x616   : > { %1984 = vmatmul.msk.f32.vlgmr.msra.gmra.mxu0 %vm790_vm6, %v916_v4 }
 0x617   : > { %1094 = vmatpush.msrb.mxu0 %v1074_v5  ;;  %1239 = vmatpush.msrb.mxu3 %v1214_v45 }
 0x619   : > { %1240 = vmatpush.msrb.mxu3 %v1213_v59 }
 0x61b   : > { %1241 = vmatpush.msrb.mxu3 %v1212_v60 }
 0x61d   : > { %1242 = vmatpush.msrb.mxu3 %v1211_v40 }
 0x61e   : > { %1990 = vmatmul.msk.f32.vlgmr.msrb.gmra.mxu0 %vm790_vm6, %v1072_v9 }
 0x680   : > { %v1105_v20 = vpop.permute.xlu0 %1104 }
 0x693   : > { %v940_v10 = vpop.f32.mrf.mxu0 }
 0x694   : > { %1100 = vrot.lane.b32.xlu1 %v940_v10, %s3177_s1  ;;  %s3212_s1 = sld [smem:[#allocation30_spill]] }
 0x69a   : > { %v2175_v1 = vld [vmem:[%s3212_s1] ss:$0 sm:$0xff] }
 0x69b   : > { %v1096_v12 = vpop.f32.mrf.mxu0 }
 0x69c   : > { %1108 = vrot.lane.b32.xlu1 %v1096_v12, %s3179_s5  ;;  %v1997_v12 = vld [vmem:[%s3151_s6 + $0x38] sm:$0xff]  ;;  %s3222_s5 = smov 24  }
 0x69d   : > { %1305 = vmatpush.msra.mxu0 %v1997_v12 }
 0x69f   : > { %1306 = vmatpush.msra.mxu0 %v1996_v14 }
 0x6a1   : > { %1307 = vmatpush.msra.mxu0 %v1995_v15 }
 0x6a3   : > { %1308 = vmatpush.msra.mxu0 %v1994_v16 }
 0x706   : > { %v1101_v18 = vpop.permute.xlu1 %1100 }
 0x707   : > { %v1111_v19 = vsel %vm790_vm6, %v2853_v11, %v1101_v18 }
 0x708   : > { %v1112_v21 = vsel %vm691_vm0, %v1111_v19, %v1105_v20 }
 0x70e   : > { %v1109_v22 = vpop.permute.xlu1 %1108 }
 0x70f   : > { %v1114_v23 = vsel %vm1113_vm10, %v1112_v21, %v1109_v22 }
 0x710   : > { %1991 = vmatmul.msk.f32.vlgmr.msrb.gmra.mxu2 %vm717_vm1, %v1114_v23 }
 0x793   : > { %v1143_v25 = vpop.f32.mrf.mxu2 }
 0x794   : > { %v1144_v26 = vadd.f32 %v2171_v24, %v1143_v25 }
 0x796   : > { %v1146_v27 = vadd.f32 %v1144_v26, %v2809_v37  ;;  %v1181_v37 = vld [vmem:[%s3157_s12 + $0x10] sm:$0xff]  ;;  %v2176_v26 = vld [vmem:[%s3213_s25] ss:$0 sm:$0xff] }
 0x797   : > { %1203 = vmatpush.msra.mxu1 %v1181_v37 }
 0x798   : > { %v1149_v28 = vsel %vm717_vm1, %v1146_v27, 0.0 }
 0x799   : > { %1150 = vadd.xlane.f32.xlu2 %v1149_v28  ;;  %1204 = vmatpush.msra.mxu1 %v1180_v34 }
 0x79b   : > { %1205 = vmatpush.msra.mxu1 %v1179_v35 }
 0x80c   : > { %v1151_v11 = vpop.xlane.xlu2 %1150 }
 0x80d   : > { %v1152_v29 = vmul.f32 %v1151_v11, %v2792_v13  ;;  %v2177_v11 = vld [vmem:[#allocation13] ss:$0 sm:$0xff] }
 0x80f   : > { %v1153_v30 = vsub.f32 %v1146_v27, %v1152_v29 }
 0x811   : > { %v1154_v31 = vmul.f32 %v1153_v30, %v1153_v30 }
 0x813   : > { %v1155_v32 = vsel %vm717_vm1, %v1154_v31, 0.0  ;;  %v2178_v31 = vld [vmem:[%s3152_s7 + $0x1] ss:$0 sm:$0xff] }
 0x814   : > { %1156 = vadd.xlane.f32.xlu0 %v1155_v32 }
 0x887   : > { %v1157_v41 = vpop.xlane.xlu0 %1156 }
 0x888   : > { %v1158_v42 = vmul.f32 %v1157_v41, %v2792_v13 }
 0x88a   : > { %v1159_v44 = vadd.f32 1e-05, %v1158_v42 }
 0x88c   : > { %2206 = vrsqrt.f32 %v1159_v44  ;;  %vm1166_vm12 = vweird.f32 %v1159_v44 }
 0x892   : > { %v2207_v47 = vpop.eup %2206 }
 0x893   : > { %v1161_v48 = vmul.f32 %v2207_v47, %v1159_v44  ;;  %vm1167_vm11 = vweird.f32 %v2207_v47 }
 0x894   : > { %vm1168_vm13 = vmor %vm1166_vm12, %vm1167_vm11 }
 0x895   : > { %v1162_v49 = vmul.f32 %v2207_v47, %v1161_v48 }
 0x897   : > { %v1163_v50 = vmul.f32 0.5, %v1162_v49 }
 0x899   : > { %v1164_v51 = vsub.f32 1.5, %v1163_v50 }
 0x89b   : > { %v1165_v52 = vmul.f32 %v2207_v47, %v1164_v51 }
 0x89d   : > { %v1169_v54 = vsel %vm1168_vm13, %v2207_v47, %v1165_v52 }
 0x89e   : > { %v1170_v55 = vmul.f32 %v1169_v54, %v1153_v30 }
 0x8a0   : > { %v1174_v57 = vmul.f32 %v2172_v53, %v1170_v55 }
 0x8a2   : > { %v1178_v58 = vadd.f32 %v2173_v56, %v1174_v57 }
 0x8a4   : > { %1992 = vmatmul.msk.f32.vlgmr.msra.gmra.mxu1 %vm717_vm1, %v1178_v58 }
 0x921   : > { %v1207_v62 = vpop.f32.mrf.mxu1 }
 0x922   : > { %v1208_v63 = vadd.f32 %v2174_v61, %v1207_v62 }
 0x924   : > { %v1210_v0 = vmax.f32 %v1208_v63, 0.0 }
 0x926   : > { %1993 = vmatmul.msk.f32.vlgmr.msrb.gmra.mxu3 %vm1223_vm14, %v1210_v0 }
 0x9a9   : > { %v1244_v2 = vpop.f32.mrf.mxu3 }
 0x9aa   : > { %v1245_v3 = vadd.f32 %v2175_v1, %v1244_v2 }
 0x9ac   : > { %v1247_v4 = vadd.f32 %v1245_v3, %v1178_v58 }
 0x9ae   : > { %v1250_v5 = vsel %vm717_vm1, %v1247_v4, 0.0 }
 0x9af   : > { %1251 = vadd.xlane.f32.xlu1 %v1250_v5 }
 0xa22   : > { %v1252_v6 = vpop.xlane.xlu1 %1251 }
 0xa23   : > { %v1253_v7 = vmul.f32 %v1252_v6, %v2792_v13 }
 0xa25   : > { %v1254_v8 = vsub.f32 %v1247_v4, %v1253_v7 }
 0xa27   : > { %v1255_v9 = vmul.f32 %v1254_v8, %v1254_v8 }
 0xa29   : > { %v1256_v10 = vsel %vm717_vm1, %v1255_v9, 0.0 }
 0xa2a   : > { %1257 = vadd.xlane.f32.xlu2 %v1256_v10 }
 0xa9d   : > { %v1258_v17 = vpop.xlane.xlu2 %1257 }
 0xa9e   : > { %v1259_v18 = vmul.f32 %v1258_v17, %v2792_v13 }
 0xaa0   : > { %v1260_v19 = vadd.f32 1e-05, %v1259_v18 }
 0xaa2   : > { %2208 = vrsqrt.f32 %v1260_v19  ;;  %vm1267_vm2 = vweird.f32 %v1260_v19 }
 0xaa8   : > { %v2209_v20 = vpop.eup %2208 }
 0xaa9   : > { %v1262_v21 = vmul.f32 %v2209_v20, %v1260_v19  ;;  %vm1268_vm15 = vweird.f32 %v2209_v20 }
 0xaaa   : > { %vm1269_vm3 = vmor %vm1267_vm2, %vm1268_vm15 }
 0xaab   : > { %v1263_v22 = vmul.f32 %v2209_v20, %v1262_v21 }
 0xaad   : > { %v1264_v23 = vmul.f32 0.5, %v1263_v22 }
 0xaaf   : > { %v1265_v24 = vsub.f32 1.5, %v1264_v23 }
 0xab1   : > { %v1266_v25 = vmul.f32 %v2209_v20, %v1265_v24 }
 0xab3   : > { %v1270_v27 = vsel %vm1269_vm3, %v2209_v20, %v1266_v25 }
 0xab4   : > { %v1271_v28 = vmul.f32 %v1270_v27, %v1254_v8 }
 0xab6   : > { %v1275_v29 = vmul.f32 %v2176_v26, %v1271_v28 }
 0xab8   : > { %v2966_v30 = vadd.f32 %v2177_v11, %v1275_v29 }
 0xaba   : > { %1999 = vmatmul.msk.f32.vlgmr.msra.gmra.mxu0 %vm717_vm1, %v2966_v30 }
 0xb37   : > { %v1310_v32 = vpop.f32.mrf.mxu0 }
 0xb38   : > { %v2973_v33 = vadd.f32 %v2178_v31, %v1310_v32 }
 0xb3a   : > { %1364 = vrot.lane.b32.xlu2 %v2973_v33, %s2532_s3  ;;  %1314 = vrot.lane.b32.xlu0 %v2973_v33, %s2533_s2  ;;  %s3215_s3 = smov 88   ;;  %s3216_s2 = smov 72  }
 0xb42   : > { %1390 = vrot.lane.b32.xlu0 %v2973_v33, %s2535_s4  ;;  %s3218_s4 = smov 56  }
 0xb4a   : > { %1470 = vrot.lane.b32.xlu0 %v2973_v33, %s2534_s29  ;;  %s3217_s29 = smov 104  }
 0xb52   : > { %1468 = vrot.lane.b32.xlu0 %v2973_v33, %s3214_s22 }
 0xb94   : > { %v1365_v37 = vpop.permute.xlu2 %1364 }
 0xb95   : > { %1385 = vmatpush.msrb.mxu1 %v1365_v37 }
 0xbac   : > { %v1315_v34 = vpop.permute.xlu0 %1314 }
 0xbad   : > { %2000 = vmatpush.xpose.msk.msra.mxu2 %vm790_vm6, %v1315_v34 }
 0xbb0   : > { %2001 = vmatmul.msk.f32.vlgmr.msra.gmra.mxu2 %vm790_vm6, %v2973_v33 }
 0xbb4   : > { %v1391_v35 = vpop.permute.xlu0 %1390 }
 0xbbc   : > { %v1471_v36 = vpop.permute.xlu0 %1470 }
 0xbbd   : > { %2006 = vmatpush.xpose.msk.msra.mxu1 %vm790_vm6, %v1471_v36 }
 0xbc4   : > { %v1469_v0 = vpop.permute.xlu0 %1468 }
 0xc33   : > { %v1337_v38 = vpop.f32.mrf.mxu2 }
 0xc34   : > { %v1338_v39 = vadd.f32 %v1337_v38, %v2838_v46 }
 0xc36   : > { %v1340_v41 = vsel %vm790_vm6, %v1338_v39, -inf }
 0xc37   : > { %1341 = vmax.xlane.f32.xlu1 %v1340_v41 }
 0xc50   : > { %1392 = vrot.lane.b32.xlu1 %v2973_v33, %s3215_s3 }
 0xc58   : > { %1548 = vrot.lane.b32.xlu1 %v2973_v33, %s3216_s2  ;;  %s3224_s2 = sld [smem:[#allocation33_spill]] }
 0xc5e   : > { %s2460_s3 = scalar_lea.hbm %s3224_s2, 16 }
 0xcaa   : > { %v1342_v42 = vpop.xlane.xlu1 %1341 }
 0xcab   : > { %v1343_v43 = vsub.f32 %v1338_v39, %v1342_v42 }
 0xcad   : > { %v1344_v44 = vmul.f32 1.442695, %v1343_v43 }
 0xcaf   : > { %2210 = vpow2.f32 %v1344_v44 }
 0xcb5   : > { %v2211_v45 = vpop.eup %2210 }
 0xcb6   : > { %v1346_v47 = vsel %vm790_vm6, %v2211_v45, 0.0 }
 0xcb7   : > { %1347 = vadd.xlane.f32.xlu2 %v1346_v47 }
 0xcc2   : > { %v1393_v48 = vpop.permute.xlu1 %1392 }
 0xcc3   : > { %2003 = vmatpush.xpose.msk.msrb.mxu0 %vm790_vm6, %v1393_v48 }
 0xcc6   : > { %2004 = vmatmul.msk.f32.vlgmr.msrb.gmra.mxu0 %vm790_vm6, %v1391_v35 }
 0xcca   : > { %v1549_v49 = vpop.permute.xlu1 %1548 }
 0xccb   : > { %2009 = vmatpush.xpose.msk.msra.mxu0 %vm790_vm6, %v1549_v49 }
 0xccf   : > { %1546 = vrot.lane.b32.xlu2 %v2973_v33, %s3217_s29 }
 0xd2a   : > { %v1348_v50 = vpop.xlane.xlu2 %1347 }
 0xd2b   : > { %2212 = vrcp.f32 %v1348_v50  ;;  %v1360_v55 = vand.u32 2147483648, %v1348_v50  ;;  %v1358_v57 = vand.u32 2147483647, %v1348_v50  ;;  %vm1354_vm5 = vweird.f32 %v1348_v50 }
 0xd2d   : > { %v1361_v59 = vor.u32 1.1754944e-38, %v1360_v55  ;;  %vm1359_vm8 = vcmp.eq.f32.partialorder %v1358_v57, 8.507059e+37 }
 0xd31   : > { %v2213_v51 = vpop.eup %2212 }
 0xd32   : > { %v1350_v52 = vmul.f32 %v2213_v51, %v1348_v50  ;;  %v1547_v53 = vpop.permute.xlu2 %1546  ;;  %vm1355_vm4 = vweird.f32 %v2213_v51 }
 0xd33   : > { %2010 = vmatmul.msk.f32.vlgmr.msra.gmra.mxu0 %vm790_vm6, %v1547_v53  ;;  %vm1356_vm7 = vmor %vm1354_vm5, %vm1355_vm4 }
 0xd34   : > { %v1351_v54 = vsub.f32 1.0, %v1350_v52 }
 0xd36   : > { %v1352_v56 = vmul.f32 %v2213_v51, %v1351_v54 }
 0xd38   : > { %v1353_v58 = vadd.f32 %v2213_v51, %v1352_v56 }
 0xd3a   : > { %v1357_v60 = vsel %vm1356_vm7, %v2213_v51, %v1353_v58 }
 0xd3b   : > { %v1362_v40 = vsel %vm1359_vm8, %v1361_v59, %v1357_v60 }
 0xd3c   : > { %v1363_v61 = vmul.f32 %v2211_v45, %v1362_v40 }
 0xd3e   : > { %2002 = vmatmul.msk.f32.vlgmr.msrb.gmra.mxu1 %vm790_vm6, %v1363_v61 }
 0xd43   : > { %v1415_v62 = vpop.f32.mrf.mxu0 }
 0xd44   : > { %v1416_v63 = vadd.f32 %v1415_v62, %v2838_v46 }
 0xd46   : > { %2007 = vmatmul.msk.f32.vlgmr.msra.gmra.mxu1 %vm790_vm6, %v1469_v0  ;;  %v1418_v1 = vsel %vm790_vm6, %v1416_v63, -inf }
 0xd47   : > { %1419 = vmax.xlane.f32.xlu1 %v1418_v1 }
 0xdb0   : > { %v1571_v2 = vpop.f32.mrf.mxu0 }
 0xdb1   : > { %v1572_v3 = vadd.f32 %v1571_v2, %v2838_v46 }
 0xdb3   : > { %v1574_v4 = vsel %vm790_vm6, %v1572_v3, -inf }
 0xdb4   : > { %1575 = vmax.xlane.f32.xlu2 %v1574_v4  ;;  %v2015_v4 = vld [vmem:[%s3153_s8 + $0x38] sm:$0xff] }
 0xdb5   : > { %1664 = vmatpush.msrb.mxu1 %v2015_v4 }
 0xdba   : > { %v1420_v5 = vpop.xlane.xlu1 %1419 }
 0xdbb   : > { %v1421_v6 = vsub.f32 %v1416_v63, %v1420_v5  ;;  %v3008_v7 = vpop.f32.mrf.mxu1  ;;  %v2014_v5 = vld [vmem:[%s3153_s8 + $0x30] sm:$0xff] }
 0xdbc   : > { %1665 = vmatpush.msrb.mxu1 %v2014_v5 }
 0xdbd   : > { %v1422_v8 = vmul.f32 1.442695, %v1421_v6  ;;  %v2013_v6 = vld [vmem:[%s3153_s8 + $0x28] sm:$0xff] }
 0xdbe   : > { %1666 = vmatpush.msrb.mxu1 %v2013_v6 }
 0xdbf   : > { %2214 = vpow2.f32 %v1422_v8  ;;  %v2012_v8 = vld [vmem:[%s3153_s8 + $0x20] sm:$0xff] }
 0xdc0   : > { %1667 = vmatpush.msrb.mxu1 %v2012_v8 }
 0xdc3   : > { %v1493_v9 = vpop.f32.mrf.mxu1 }
 0xdc4   : > { %v1494_v10 = vadd.f32 %v1493_v9, %v2838_v46 }
 0xdc5   : > { %v2215_v12 = vpop.eup %2214 }
 0xdc6   : > { %v1424_v14 = vsel %vm790_vm6, %v2215_v12, 0.0  ;;  %v1496_v15 = vsel %vm790_vm6, %v1494_v10, -inf }
 0xdc7   : > { %1425 = vadd.xlane.f32.xlu1 %v1424_v14  ;;  %1497 = vmax.xlane.f32.xlu0 %v1496_v15 }
 0xde0   : > { %1442 = vrot.lane.b32.xlu1 %v2973_v33, %s3218_s4  ;;  %s3225_s4 = sshll.u32 %s2768_s13, 3 }
 0xe27   : > { %v1576_v16 = vpop.xlane.xlu2 %1575 }
 0xe28   : > { %v1577_v17 = vsub.f32 %v1572_v3, %v1576_v16 }
 0xe2a   : > { %v1578_v18 = vmul.f32 1.442695, %v1577_v17  ;;  %v2179_v17 = vld [vmem:[%s3154_s9 + $0x1] ss:$0 sm:$0xff] }
 0xe2c   : > { %2216 = vpow2.f32 %v1578_v18 }
 0xe32   : > { %v2217_v19 = vpop.eup %2216 }
 0xe33   : > { %v1580_v20 = vsel %vm790_vm6, %v2217_v19, 0.0 }
 0xe34   : > { %1581 = vadd.xlane.f32.xlu2 %v1580_v20 }
 0xe3a   : > { %v1426_v21 = vpop.xlane.xlu1 %1425  ;;  %v1498_v46 = vpop.xlane.xlu0 %1497 }
 0xe3b   : > { %2218 = vrcp.f32 %v1426_v21  ;;  %v1499_v22 = vsub.f32 %v1494_v10, %v1498_v46  ;;  %v1438_v31 = vand.u32 2147483648, %v1426_v21  ;;  %vm1432_vm11 = vweird.f32 %v1426_v21 }
 0xe3c   : > { %v1436_v32 = vand.u32 2147483647, %v1426_v21 }
 0xe3d   : > { %v1500_v23 = vmul.f32 1.442695, %v1499_v22  ;;  %v1439_v34 = vor.u32 1.1754944e-38, %v1438_v31 }
 0xe3e   : > { %vm1437_vm13 = vcmp.eq.f32.partialorder %v1436_v32, 8.507059e+37 }
 0xe3f   : > { %2220 = vpow2.f32 %v1500_v23 }
 0xe41   : > { %v2219_v24 = vpop.eup %2218 }
 0xe42   : > { %v1428_v25 = vmul.f32 %v2219_v24, %v1426_v21  ;;  %vm1433_vm9 = vweird.f32 %v2219_v24 }
 0xe43   : > { %vm1434_vm12 = vmor %vm1432_vm11, %vm1433_vm9 }
 0xe44   : > { %v1429_v26 = vsub.f32 1.0, %v1428_v25  ;;  %v2023_v25 = vld [vmem:[%s3157_s12 + $0x38] sm:$0xff] }
 0xe45   : > { %v2221_v27 = vpop.eup %2220 }
 0xe46   : > { %v1430_v28 = vmul.f32 %v2219_v24, %v1429_v26  ;;  %v1502_v11 = vsel %vm790_vm6, %v2221_v27, 0.0  ;;  %v2021_v26 = vld [vmem:[%s3157_s12 + $0x28] sm:$0xff] }
 0xe47   : > { %1503 = vadd.xlane.f32.xlu0 %v1502_v11  ;;  %v2032_v11 = vld [vmem:[%s3159_s14 + $0x70] sm:$0xff] }
 0xe48   : > { %v1431_v29 = vadd.f32 %v2219_v24, %v1430_v28  ;;  %v2033_v28 = vld [vmem:[%s3159_s14 + $0x78] sm:$0xff] }
 0xe49   : > { %1766 = vmatpush.msrb.mxu0 %v2033_v28 }
 0xe4a   : > { %v1435_v37 = vsel %vm1434_vm12, %v2219_v24, %v1431_v29  ;;  %v2031_v29 = vld [vmem:[%s3159_s14 + $0x68] sm:$0xff] }
 0xe4b   : > { %v1440_v35 = vsel %vm1437_vm13, %v1439_v34, %v1435_v37  ;;  %1767 = vmatpush.msrb.mxu0 %v2032_v11  ;;  %v2030_v37 = vld [vmem:[%s3159_s14 + $0x60] sm:$0xff] }
 0xe4c   : > { %1598 = vrot.lane.b32.xlu2 %v2973_v33, %s3219_s19  ;;  %v1441_v38 = vmul.f32 %v2215_v12, %v1440_v35  ;;  %v2029_v35 = vld [vmem:[%s3159_s14 + $0x58] sm:$0xff]  ;;  %s683_s19 = scalar_lea.vmem [#allocation14], %s3225_s4 }
 0xe4d   : > { %1768 = vmatpush.msrb.mxu0 %v2031_v29 }
 0xe4f   : > { %1769 = vmatpush.msrb.mxu0 %v2030_v37 }
 0xe51   : > { %1770 = vmatpush.msrb.mxu0 %v2029_v35 }
 0xe52   : > { %v1443_v36 = vpop.permute.xlu1 %1442 }
 0xe53   : > { %1463 = vmatpush.msrb.mxu2 %v1443_v36 }
 0xe54   : > { %2005 = vmatmul.msk.f32.vlgmr.msrb.gmra.mxu2 %vm790_vm6, %v1441_v38 }
 0xe5b   : > { %1520 = vrot.lane.b32.xlu0 %v2973_v33, %s3220_s16  ;;  %s1827_s16 = sshll.u32 %s683_s19, 4  ;;  %s1828_s16 = int_to_ptr.vmem [resolvable:$true] %s1827_s16 }
 0xea7   : > { %v1582_v39 = vpop.xlane.xlu2 %1581 }
 0xea8   : > { %2222 = vrcp.f32 %v1582_v39  ;;  %v1594_v45 = vand.u32 2147483648, %v1582_v39  ;;  %v1592_v48 = vand.u32 2147483647, %v1582_v39  ;;  %vm1588_vm2 = vweird.f32 %v1582_v39 }
 0xeaa   : > { %v1595_v50 = vor.u32 1.1754944e-38, %v1594_v45  ;;  %vm1593_vm4 = vcmp.eq.f32.partialorder %v1592_v48, 8.507059e+37  ;;  %v2181_v48 = vld [vmem:[%s3210_s20 + $0x1] ss:$0 sm:$0xff] }
 0xeae   : > { %v2223_v41 = vpop.eup %2222 }
 0xeaf   : > { %v1584_v42 = vmul.f32 %v2223_v41, %v1582_v39  ;;  %v1599_v43 = vpop.permute.xlu2 %1598  ;;  %vm1589_vm15 = vweird.f32 %v2223_v41 }
 0xeb0   : > { %1619 = vmatpush.msra.mxu2 %v1599_v43  ;;  %vm1590_vm3 = vmor %vm1588_vm2, %vm1589_vm15 }
 0xeb1   : > { %v1585_v44 = vsub.f32 1.0, %v1584_v42 }
 0xeb3   : > { %v1586_v47 = vmul.f32 %v2223_v41, %v1585_v44  ;;  %v2180_v44 = vld [vmem:[%s3155_s10 + $0x1] ss:$0 sm:$0xff] }
 0xeb5   : > { %v1587_v49 = vadd.f32 %v2223_v41, %v1586_v47 }
 0xeb7   : > { %v1591_v51 = vsel %vm1590_vm3, %v2223_v41, %v1587_v49 }
 0xeb8   : > { %v1596_v52 = vsel %vm1593_vm4, %v1595_v50, %v1591_v51  ;;  %v2028_v51 = vld [vmem:[%s3159_s14 + $0x50] sm:$0xff] }
 0xeb9   : > { %v1597_v53 = vmul.f32 %v2217_v19, %v1596_v52  ;;  %1771 = vmatpush.msrb.mxu0 %v2028_v51  ;;  %v2027_v52 = vld [vmem:[%s3159_s14 + $0x48] sm:$0xff] }
 0xeba   : > { %v1504_v33 = vpop.xlane.xlu0 %1503 }
 0xebb   : > { %2011 = vmatmul.msk.f32.vlgmr.msra.gmra.mxu2 %vm790_vm6, %v1597_v53  ;;  %2224 = vrcp.f32 %v1504_v33  ;;  %v1516_v57 = vand.u32 2147483648, %v1504_v33  ;;  %v1514_v59 = vand.u32 2147483647, %v1504_v33  ;;  %vm1510_vm7 = vweird.f32 %v1504_v33  ;;  %1772 = vmatpush.msrb.mxu0 %v2027_v52  ;;  %v2026_v53 = vld [vmem:[%s3159_s14 + $0x40] sm:$0xff] }
 0xebd   : > { %v1517_v40 = vor.u32 1.1754944e-38, %v1516_v57  ;;  %vm1515_vm9 = vcmp.eq.f32.partialorder %v1514_v59, 8.507059e+37  ;;  %1773 = vmatpush.msrb.mxu0 %v2026_v53  ;;  %v2183_v57 = vld [vmem:[%s3212_s1 + $0x1] ss:$0 sm:$0xff] }
 0xec1   : > { %v2225_v54 = vpop.eup %2224 }
 0xec2   : > { %v1506_v55 = vmul.f32 %v2225_v54, %v1504_v33  ;;  %vm1511_vm5 = vweird.f32 %v2225_v54  ;;  %v2182_v33 = vld [vmem:[%s3211_s0 + $0x1] ss:$0 sm:$0xff] }
 0xec3   : > { %vm1512_vm8 = vmor %vm1510_vm7, %vm1511_vm5 }
 0xec4   : > { %v1507_v56 = vsub.f32 1.0, %v1506_v55 }
 0xec6   : > { %v1508_v58 = vmul.f32 %v2225_v54, %v1507_v56 }
 0xec8   : > { %v1509_v60 = vadd.f32 %v2225_v54, %v1508_v58 }
 0xeca   : > { %v1513_v61 = vsel %vm1512_vm8, %v2225_v54, %v1509_v60 }
 0xecb   : > { %v1518_v62 = vsel %vm1515_vm9, %v1517_v40, %v1513_v61 }
 0xecc   : > { %v1519_v63 = vmul.f32 %v2221_v27, %v1518_v62  ;;  %v2020_v27 = vld [vmem:[%s3157_s12 + $0x20] sm:$0xff] }
 0xecd   : > { %v1521_v0 = vpop.permute.xlu0 %1520 }
 0xece   : > { %1541 = vmatpush.msra.mxu3 %v1521_v0 }
 0xecf   : > { %2008 = vmatmul.msk.f32.vlgmr.msra.gmra.mxu3 %vm790_vm6, %v1519_v63 }
 0xed0   : > { %1732 = vmatpush.msrb.mxu3 %v2023_v25 }
 0xed7   : > { %v1465_v1 = vpop.f32.mrf.mxu2 }
 0xed8   : > { %1625 = vrot.lane.b32.xlu0 %v1465_v1, %s3221_s15  ;;  %s1815_s15 = scalar_lea.sflag [#allocation4], %s2768_s13 }
 0xf3e   : > { %v1621_v2 = vpop.f32.mrf.mxu2 }
 0xf3f   : > { %1633 = vrot.lane.b32.xlu2 %v1621_v2, %s3222_s5  ;;  %s2038_s5 = sshll.u32 %s2664_s21, 3 }
 0xf40   : > { %s1825_s29 = scalar_lea.hbm %s3224_s2, %s2038_s5 }
 0xf41   : > { %s1829_s21 = sshll.u32 %s1825_s29, 4  ;;  %s1830_s21 = int_to_ptr.hbm [resolvable:$true] %s1829_s21 }
 0xf4a   : > { %v1626_v9 = vpop.permute.xlu0 %1625 }
 0xf4b   : > { %v1636_v10 = vsel %vm790_vm6, %v3008_v7, %v1626_v9 }
 0xf52   : > { %v1543_v3 = vpop.f32.mrf.mxu3 }
 0xf53   : > { %1629 = vrot.lane.b32.xlu1 %v1543_v3, %s3223_s17  ;;  %s2454_s17 = sshra.s32 %s1830_s21, 4  ;;  %s2455_s17 = int_to_ptr.hbm [resolvable:$true] %s2454_s17 }
 0xf54   : > { %s2456_s23 = scalar_lea.hbm %s2455_s17, 8  ;;  %p2461_p12 = scmp.lt.s32.totalorder %s2455_s17, %s3224_s2 }
 0xf55   : > { %p2457_p1 = scmp.ne.s32.totalorder %s2455_s17, %s2456_s23  ;;  %p2462_p7 = scmp.lt.s32.totalorder %s2460_s3, %s2456_s23 }
 0xf57   : > { %p2458_p3 = pnand %p2457_p1, %p2737_p5  ;;  %p2463_p8 = por %p2462_p7, %p2461_p12 }
 0xf59   : > { %p2459_p4 = pneg %p2458_p3 }
 0xf5b   : > { %p2464_p9 = pnand %p2463_p8, %p2459_p4 }
 0xf99   : > { %v1634_v14 = vpop.permute.xlu2 %1633 }
 0xfc5   : > { %v1630_v12 = vpop.permute.xlu1 %1629 }
 0xfc6   : > { %v1637_v15 = vsel %vm691_vm0, %v1636_v10, %v1630_v12 }
 0xfc7   : > { %v1638_v16 = vsel %vm1113_vm10, %v1637_v15, %v1634_v14  ;;  %v2184_v14 = vld [vmem:[%s3213_s25 + $0x1] ss:$0 sm:$0xff] }
 0xfc8   : > { %2017 = vmatmul.msk.f32.vlgmr.msrb.gmra.mxu1 %vm717_vm1, %v1638_v16  ;;  %v2185_v16 = vld [vmem:[#allocation13 + $0x1] ss:$0 sm:$0xff] }
0x1045   : > { %v1669_v18 = vpop.f32.mrf.mxu1 }
0x1046   : > { %v1670_v19 = vadd.f32 %v2179_v17, %v1669_v18 }
0x1048   : > { %v1672_v20 = vadd.f32 %v1670_v19, %v2966_v30  ;;  %v2022_v30 = vld [vmem:[%s3157_s12 + $0x30] sm:$0xff] }
0x1049   : > { %1733 = vmatpush.msrb.mxu3 %v2022_v30 }
0x104a   : > { %v1677_v21 = vsel %vm717_vm1, %v1672_v20, 0.0 }
0x104b   : > { %1678 = vadd.xlane.f32.xlu0 %v1677_v21  ;;  %1734 = vmatpush.msrb.mxu3 %v2021_v26 }
0x104d   : > { %1735 = vmatpush.msrb.mxu3 %v2020_v27 }
0x10be   : > { %v1679_v7 = vpop.xlane.xlu0 %1678 }
0x10bf   : > { %v1680_v46 = vmul.f32 %v1679_v7, %v2792_v13 }
0x10c1   : > { %v1681_v22 = vsub.f32 %v1672_v20, %v1680_v46 }
0x10c3   : > { %v1682_v23 = vmul.f32 %v1681_v22, %v1681_v22 }
0x10c5   : > { %v1683_v24 = vsel %vm717_vm1, %v1682_v23, 0.0 }
0x10c6   : > { %1684 = vadd.xlane.f32.xlu1 %v1683_v24 }
0x1139   : > { %v1685_v31 = vpop.xlane.xlu1 %1684 }
0x113a   : > { %v1686_v32 = vmul.f32 %v1685_v31, %v2792_v13 }
0x113c   : > { %v1687_v34 = vadd.f32 1e-05, %v1686_v32 }
0x113e   : > { %2226 = vrsqrt.f32 %v1687_v34  ;;  %vm1694_vm6 = vweird.f32 %v1687_v34 }
0x1144   : > { %v2227_v36 = vpop.eup %2226 }
0x1145   : > { %v1689_v38 = vmul.f32 %v2227_v36, %v1687_v34  ;;  %vm1695_vm0 = vweird.f32 %v2227_v36 }
0x1146   : > { %vm1696_vm10 = vmor %vm1694_vm6, %vm1695_vm0 }
0x1147   : > { %v1690_v39 = vmul.f32 %v2227_v36, %v1689_v38 }
0x1149   : > { %v1691_v41 = vmul.f32 0.5, %v1690_v39 }
0x114b   : > { %v1692_v42 = vsub.f32 1.5, %v1691_v41 }
0x114d   : > { %v1693_v43 = vmul.f32 %v2227_v36, %v1692_v42 }
0x114f   : > { %v1697_v45 = vsel %vm1696_vm10, %v2227_v36, %v1693_v43 }
0x1150   : > { %v1698_v47 = vmul.f32 %v1697_v45, %v1681_v22 }
0x1152   : > { %v1702_v49 = vmul.f32 %v2180_v44, %v1698_v47 }
0x1154   : > { %v1706_v50 = vadd.f32 %v2181_v48, %v1702_v49 }
0x1156   : > { %2025 = vmatmul.msk.f32.vlgmr.msrb.gmra.mxu3 %vm717_vm1, %v1706_v50 }
0x11d9   : > { %v1737_v54 = vpop.f32.mrf.mxu3 }
0x11da   : > { %v1738_v55 = vadd.f32 %v2182_v33, %v1737_v54 }
0x11dc   : > { %v1740_v56 = vmax.f32 %v1738_v55, 0.0 }
0x11de   : > { %2035 = vmatmul.msk.f32.vlgmr.msrb.gmra.mxu0 %vm1223_vm14, %v1740_v56 }
0x125b   : > { %v1775_v58 = vpop.f32.mrf.mxu0 }
0x125c   : > { %v1776_v59 = vadd.f32 %v2183_v57, %v1775_v58 }
0x125e   : > { %v1778_v60 = vadd.f32 %v1776_v59, %v1706_v50 }
0x1260   : > { %v1783_v40 = vsel %vm717_vm1, %v1778_v60, 0.0 }
0x1261   : > { %1784 = vadd.xlane.f32.xlu2 %v1783_v40 }
0x12d4   : > { %v1785_v61 = vpop.xlane.xlu2 %1784 }
0x12d5   : > { %v1786_v62 = vmul.f32 %v1785_v61, %v2792_v13 }
0x12d7   : > { %v1787_v63 = vsub.f32 %v1778_v60, %v1786_v62 }
0x12d9   : > { %v1788_v0 = vmul.f32 %v1787_v63, %v1787_v63 }
0x12db   : > { %v1789_v1 = vsel %vm717_vm1, %v1788_v0, 0.0 }
0x12dc   : > { %1790 = vadd.xlane.f32.xlu0 %v1789_v1 }
0x134f   : > { %v1791_v2 = vpop.xlane.xlu0 %1790 }
0x1350   : > { %v1792_v3 = vmul.f32 %v1791_v2, %v2792_v13 }
0x1352   : > { %v1793_v4 = vadd.f32 1e-05, %v1792_v3 }
0x1354   : > { %2228 = vrsqrt.f32 %v1793_v4  ;;  %vm1800_vm11 = vweird.f32 %v1793_v4 }
0x135a   : > { %v2229_v5 = vpop.eup %2228 }
0x135b   : > { %v1795_v6 = vmul.f32 %v2229_v5, %v1793_v4  ;;  %vm1801_vm14 = vweird.f32 %v2229_v5 }
0x135c   : > { %vm1802_vm12 = vmor %vm1800_vm11, %vm1801_vm14 }
0x135d   : > { %v1796_v8 = vmul.f32 %v2229_v5, %v1795_v6 }
0x135f   : > { %v1797_v9 = vmul.f32 0.5, %v1796_v8 }
0x1361   : > { %v1798_v10 = vsub.f32 1.5, %v1797_v9 }
0x1363   : > { %v1799_v12 = vmul.f32 %v2229_v5, %v1798_v10 }
0x1365   : > { %v1803_v13 = vsel %vm1802_vm12, %v2229_v5, %v1799_v12 }
0x1366   : > { %v1804_v15 = vmul.f32 %v1803_v13, %v1787_v63 }
0x1368   : > { %v1808_v17 = vmul.f32 %v2184_v14, %v1804_v15 }
0x136a   : > { %v1812_v18 = vadd.f32 %v2185_v16, %v1808_v17 }
0x136c   : > { %1813 = vst.msk [vmem:[%s683_s19] sm:$0xff] %vm717_vm1, %v1812_v18 }
0x136d   : > { %2467 = shalt.err (!%p2464_p9)
}
0x136e   : > { %2067 = dma.vmem_to_hbm [thread:$0]  (%p2737_p5), %s1828_s16, 128, %s1830_s21, %s1815_s15  }
0x136f PF: > { %s1841_s13 = sand.u32 1, %s2506_s27   ;;  %p3226_p10 = scmp.ge.s32.totalorder %s2518_s30, 2 }
0x1370   : > { %s1842_s19 = scalar_lea.sflag [#allocation4], %s1841_s13 }
0x1371   : > { %p2093_p13 = pnand %p3226_p10, %p2741_p6 }
0x1373   : > { %p2094_p11 = pneg %p2093_p13 }
0x1375   : > { %2501 = dma.done.wait (%p2094_p11), %s1842_s19, 128  }
0x1376   : > { %2503 = vsyncadd (%p2094_p11), %s1842_s19, 4294967168  ;;  %s3227_s17 = sld [smem:[#allocation20_spill]]  ;;  %p34_p0 = scmp.ge.s32.totalorder %s2711_s18, 4  }
0x1377   : > { %s3228_s29 = sld [smem:[#allocation21_spill]]  ;;  %s3229_s27 = smov %s2510_s28 }
0x1378   : > { %s3231_s30 = smov %s2711_s18  ;;  %36 = sbr.rel (!%p34_p0) target bundleno = 21 (0x15), region = 173 }
0x137c   : > { %s3230_s28 = smov %s3227_s17 }
0x137d   :  { %1848 = vsyncpa [#allocation3], 1 }
0x137e   :  { %1850 = vsyncpa [#allocation3 + $0x1], 1 }
0x137f   :  { %1851 = vsyncpa [#allocation6], 1 }
0x1380   :  { %1852 = vsyncpa [#allocation9], 1 }
0x1381   :  { %1853 = vsyncpa [#allocation12], 1 }
0x1382   :  { %1854 = vsyncpa [#allocation4], 1 }
0x1383   :  { %1856 = vsyncpa [#allocation4 + $0x1], 1 }

</bundles_post_ra>
